<compile_context>
chip_gen: v6e
topology: v6e:2x2x1
jax: 0.10.0
libtpu: 0.0.40
codegen_flags: <defaults>
</compile_context>

<pallas_src>
import functools

import jax
import jax.numpy as jnp
from jax import lax
from jax.experimental import pallas as pl
from jax.experimental.pallas import tpu as pltpu


_ALIGN = 8


def _align8(v):
    return ((v + _ALIGN - 1) // _ALIGN) * _ALIGN


# --------------------------------------------------------------------------
# Fused 3-layer GAT kernel
# --------------------------------------------------------------------------
def _gat3_kernel(x_ref, adj_ref, p_ref, out_ref, *, layout):
    n = x_ref.shape[0]

    # Additive edge mask, computed once and tiled along sublanes once so that
    # all heads of a layer share a single masked-softmax pass.
    neg = jnp.where(adj_ref[...] > 0.0, 0.0, -1e9)                    # [N, N]
    max_heads = max(e[1] for e in layout)
    neg_t = jnp.concatenate([neg] * max_heads, axis=0)                # [Hmax*N, N]

    def gat_layer(h_in, entry, relu):
        fin, heads, out_ch, w_row, s_row, d_row, b_row = entry
        hc = heads * out_ch

        # Static slices into the packed parameter slab (all 8-aligned rows).
        w     = p_ref[w_row:w_row + fin,   0:hc]                      # [Fin, H*C]
        s_blk = p_ref[s_row:s_row + heads, 0:hc]                      # [H, H*C]
        d_blk = p_ref[d_row:d_row + heads, 0:hc]                      # [H, H*C]
        bias  = p_ref[b_row:b_row + 1,     0:hc]                      # [1, H*C]

        # Linear transform on the MXU.
        xp = jnp.dot(h_in, w, preferred_element_type=jnp.float32)     # [N, H*C]

        # Attention logits for ALL heads with two block-diagonal MXU matmuls:
        #   a_src[h, j] = sum_c att_src[h, c] * xp[j, h*C + c]   -> [H, N]
        #   a_dst[i, h] = sum_c att_dst[h, c] * xp[i, h*C + c]   -> [N, H]
        a_src = lax.dot_general(s_blk, xp, (((1,), (1,)), ((), ())),
                                preferred_element_type=jnp.float32)   # [H, N]
        a_dst = lax.dot_general(xp, d_blk, (((1,), (1,)), ((), ())),
                                preferred_element_type=jnp.float32)   # [N, H]

        # Stack all heads along sublanes: block h of the slab holds
        #   e[i, j] = a_dst[i, h] + a_src[h, j].
        # The whole LeakyReLU / mask / max / exp / sum / reciprocal chain then
        # runs ONCE per layer on the [H*N, N] slab.
        logits = jnp.concatenate(
            [a_dst[:, h:h + 1] + a_src[h:h + 1, :] for h in range(heads)],
            axis=0)                                                   # [H*N, N]
        logits = jnp.maximum(logits, 0.2 * logits) + neg_t[:heads * n, :]
        logits = logits - jnp.max(logits, axis=1, keepdims=True)
        p = jnp.exp(logits)                      # masked entries underflow to 0
        denom = jnp.sum(p, axis=1, keepdims=True)          # >= 1, never zero
        alpha = p * pl.reciprocal(denom, approx=True)                 # [H*N, N]

        # Per-head aggregation: tiny [N,N] x [N,C] MXU dots (heads <= 7).
        # The layer output is assembled as a value -> stays in vregs.
        outs = [jnp.dot(alpha[h * n:(h + 1) * n, :],
                        xp[:, h * out_ch:(h + 1) * out_ch],
                        preferred_element_type=jnp.float32)
                for h in range(heads)]
        out = jnp.concatenate(outs, axis=-1) + bias                   # [N, H*C]
        if relu:
            out = jnp.maximum(out, 0.0)
        return out

    h1 = gat_layer(x_ref[...], layout[0], True)
    h2 = gat_layer(h1, layout[1], True)
    out_ref[...] = gat_layer(h2, layout[2], False)


# --------------------------------------------------------------------------
# Parameter packing: all layers' params -> one 2-D slab (one DMA)
# --------------------------------------------------------------------------
def pack_params(params):
    """Pack {W, att_src_blk, att_dst_blk, bias} of every layer into a single
    f32 slab.  Each component starts at an 8-aligned sublane offset so the
    in-kernel static slices stay tile-aligned."""
    maxw = max(p["heads"] * p["out_ch"] for p in params)
    layout = []
    r = 0
    for p in params:
        fin = p["w"].shape[0]
        heads, out_ch = p["heads"], p["out_ch"]
        w_row = r; r = _align8(r + fin)
        s_row = r; r = _align8(r + heads)
        d_row = r; r = _align8(r + heads)
        b_row = r; r = _align8(r + 1)
        layout.append((fin, heads, out_ch, w_row, s_row, d_row, b_row))
    total = _align8(r)

    slab = jnp.zeros((total, maxw), jnp.float32)
    for p, (fin, heads, out_ch, w_row, s_row, d_row, b_row) in zip(params, layout):
        hc = heads * out_ch
        slab = slab.at[w_row:w_row + fin, :hc].set(p["w"])
        slab = slab.at[s_row:s_row + heads, :hc].set(p["att_src_blk"])
        slab = slab.at[d_row:d_row + heads, :hc].set(p["att_dst_blk"])
        slab = slab.at[b_row, :hc].set(p["bias"])
    return slab, tuple(layout)


def gat_forward(x, adj, params):
    """Full 3-layer GAT forward pass in a single fused Pallas kernel."""
    n = x.shape[0]
    out_dim = params[-1]["heads"] * params[-1]["out_ch"]
    slab, layout = pack_params(params)

    kernel = functools.partial(_gat3_kernel, layout=layout)
    vmem = pl.BlockSpec(memory_space=pltpu.MemorySpace.VMEM)

    return pl.pallas_call(
        kernel,
        out_shape=jax.ShapeDtypeStruct((n, out_dim), jnp.float32),
        in_specs=[vmem, vmem, vmem],
        out_specs=vmem,
    )(x, adj, slab)


# --------------------------------------------------------------------------
# Parameter construction (deterministic, synthetic)
# --------------------------------------------------------------------------
def _block_diag_att(att):
    """[H, C] -> [H, H*C] block-diagonal matrix for the batched logit matmul."""
    heads, out_ch = att.shape
    m = jnp.zeros((heads, heads * out_ch), jnp.float32)
    for h in range(heads):
        m = m.at[h, h * out_ch:(h + 1) * out_ch].set(att[h])
    return m


def make_gat_params(key, num_features, hidden, num_classes):
    """Per-layer params mirroring GATConv(num_features, hidden, 7),
    GATConv(hidden*7, hidden, 6), GATConv(hidden*6, num_classes, 6)."""
    layer_cfg = [
        (num_features, hidden, 7),
        (hidden * 7, hidden, 6),
        (hidden * 6, num_classes, 6),
    ]
    params = []
    for (fin, c, h) in layer_cfg:
        key, kw, ks, kd = jax.random.split(key, 4)
        w = 0.1 * jax.random.normal(kw, (fin, h * c), jnp.float32)
        att_src = 0.1 * jax.random.normal(ks, (h, c), jnp.float32)
        att_dst = 0.1 * jax.random.normal(kd, (h, c), jnp.float32)
        bias = jnp.zeros((h * c,), jnp.float32)
        params.append(dict(
            w=w, bias=bias, heads=h, out_ch=c,
            att_src_blk=_block_diag_att(att_src),   # [H, H*C]
            att_dst_blk=_block_diag_att(att_dst),   # [H, H*C]
        ))
    return params


# --------------------------------------------------------------------------
# Driver
# --------------------------------------------------------------------------
if __name__ == "__main__":
    N = 16              # number of graph nodes
    NUM_FEATURES = 16   # data[0]['x'].shape[1]
    HIDDEN = 8          # hidden_channels
    NUM_CLASSES = 4     # len(set(data[0]['y']))
    NUM_EDGES = 40

    key = jax.random.PRNGKey(0)
    kx, ke_src, ke_dst, kp = jax.random.split(key, 4)

    x = jax.random.normal(kx, (N, NUM_FEATURES), jnp.float32)

    # edge_index: [2, E], row 0 = source, row 1 = destination
    src = jax.random.randint(ke_src, (NUM_EDGES,), 0, N)
    dst = jax.random.randint(ke_dst, (NUM_EDGES,), 0, N)

    # Dense adjacency mask adj[dst, src] = 1, plus self-loops (GATConv default).
    adj = jnp.zeros((N, N), jnp.float32).at[dst, src].set(1.0)
    adj = jnp.maximum(adj, jnp.eye(N, dtype=jnp.float32))

    # TODO(synk): F.dropout(p=0.1) is identity in eval mode; training-mode
    # dropout (stateful PRNG masks) is not implemented here.
    params = make_gat_params(kp, NUM_FEATURES, HIDDEN, NUM_CLASSES)

    out = gat_forward(x, adj, params)           # [N, NUM_CLASSES * 6]
    jax.block_until_ready(out)

    assert out.shape == (N, NUM_CLASSES * 6), out.shape
    assert bool(jnp.all(jnp.isfinite(out)))
    print("KERNEL_OK")
</pallas_src>

<mosaic_0001>
module attributes {stable_mosaic.version = 11 : i64} {
  func.func @_gat3_kernel(%arg0: memref<16x16xf32, #tpu.memory_space<vmem>>, %arg1: memref<16x16xf32, #tpu.memory_space<vmem>>, %arg2: memref<192x56xf32, #tpu.memory_space<vmem>>, %arg3: memref<16x24xf32, #tpu.memory_space<vmem>>) attributes {dimension_semantics = [], scalar_prefetch = 0 : i64, scratch_operands = 0 : i64, tpu.core_type = #tpu.core_type<tc>} {
    %c0 = arith.constant 0 : index
    %c0_0 = arith.constant 0 : index
    %0 = vector.load %arg1[%c0, %c0_0] : memref<16x16xf32, #tpu.memory_space<vmem>>, vector<16x16xf32>
    %cst = arith.constant 0.000000e+00 : f32
    %1 = vector.broadcast %cst : f32 to vector<16x16xf32>
    %2 = arith.cmpf ogt, %0, %1 : vector<16x16xf32>
    %cst_1 = arith.constant 0.000000e+00 : f32
    %cst_2 = arith.constant -1.000000e+09 : f32
    %3 = vector.broadcast %cst_1 : f32 to vector<16x16xf32>
    %4 = vector.broadcast %cst_2 : f32 to vector<16x16xf32>
    %5 = arith.select %2, %3, %4 : vector<16x16xi1>, vector<16x16xf32>
    %6 = tpu.concatenate %5, %5, %5, %5, %5, %5, %5 in 0 : vector<16x16xf32>, vector<16x16xf32>, vector<16x16xf32>, vector<16x16xf32>, vector<16x16xf32>, vector<16x16xf32>, vector<16x16xf32> -> vector<112x16xf32>
    %c0_3 = arith.constant 0 : index
    %c0_4 = arith.constant 0 : index
    %7 = vector.load %arg0[%c0_3, %c0_4] : memref<16x16xf32, #tpu.memory_space<vmem>>, vector<16x16xf32>
    %c0_5 = arith.constant 0 : index
    %c0_6 = arith.constant 0 : index
    %8 = vector.load %arg2[%c0_5, %c0_6] : memref<192x56xf32, #tpu.memory_space<vmem>>, vector<16x56xf32>
    %c16 = arith.constant 16 : index
    %c0_7 = arith.constant 0 : index
    %9 = vector.load %arg2[%c16, %c0_7] : memref<192x56xf32, #tpu.memory_space<vmem>>, vector<7x56xf32>
    %c24 = arith.constant 24 : index
    %c0_8 = arith.constant 0 : index
    %10 = vector.load %arg2[%c24, %c0_8] : memref<192x56xf32, #tpu.memory_space<vmem>>, vector<7x56xf32>
    %c32 = arith.constant 32 : index
    %c0_9 = arith.constant 0 : index
    %11 = vector.load %arg2[%c32, %c0_9] : memref<192x56xf32, #tpu.memory_space<vmem>>, vector<1x56xf32>
    %cst_10 = arith.constant dense<0.000000e+00> : vector<16x56xf32>
    %12 = tpu.matmul %7, %8, %cst_10 {dimension_numbers = #tpu.dot_dimension_numbers<[1], [0], [0], [1], [0, 0, 1, 1], [], []>} : vector<16x16xf32>, vector<16x56xf32>, vector<16x56xf32> -> vector<16x56xf32>
    %cst_11 = arith.constant dense<0.000000e+00> : vector<7x16xf32>
    %13 = tpu.matmul %9, %12, %cst_11 {dimension_numbers = #tpu.dot_dimension_numbers<[1], [1], [0], [0], [0, 0, 1, 0], [], []>} : vector<7x56xf32>, vector<16x56xf32>, vector<7x16xf32> -> vector<7x16xf32>
    %cst_12 = arith.constant dense<0.000000e+00> : vector<16x7xf32>
    %14 = tpu.matmul %12, %10, %cst_12 {dimension_numbers = #tpu.dot_dimension_numbers<[1], [1], [0], [0], [0, 0, 1, 0], [], []>} : vector<16x56xf32>, vector<7x56xf32>, vector<16x7xf32> -> vector<16x7xf32>
    %15 = vector.extract_strided_slice %14 {offsets = [0, 0], sizes = [16, 1], strides = [1, 1]} : vector<16x7xf32> to vector<16x1xf32>
    %16 = vector.extract_strided_slice %13 {offsets = [0, 0], sizes = [1, 16], strides = [1, 1]} : vector<7x16xf32> to vector<1x16xf32>
    %17 = vector.broadcast %15 : vector<16x1xf32> to vector<16x16xf32>
    %18 = vector.broadcast %16 : vector<1x16xf32> to vector<16x16xf32>
    %19 = arith.addf %17, %18 : vector<16x16xf32>
    %20 = vector.extract_strided_slice %14 {offsets = [0, 1], sizes = [16, 1], strides = [1, 1]} : vector<16x7xf32> to vector<16x1xf32>
    %21 = vector.extract_strided_slice %13 {offsets = [1, 0], sizes = [1, 16], strides = [1, 1]} : vector<7x16xf32> to vector<1x16xf32>
    %22 = vector.broadcast %20 : vector<16x1xf32> to vector<16x16xf32>
    %23 = vector.broadcast %21 : vector<1x16xf32> to vector<16x16xf32>
    %24 = arith.addf %22, %23 : vector<16x16xf32>
    %25 = vector.extract_strided_slice %14 {offsets = [0, 2], sizes = [16, 1], strides = [1, 1]} : vector<16x7xf32> to vector<16x1xf32>
    %26 = vector.extract_strided_slice %13 {offsets = [2, 0], sizes = [1, 16], strides = [1, 1]} : vector<7x16xf32> to vector<1x16xf32>
    %27 = vector.broadcast %25 : vector<16x1xf32> to vector<16x16xf32>
    %28 = vector.broadcast %26 : vector<1x16xf32> to vector<16x16xf32>
    %29 = arith.addf %27, %28 : vector<16x16xf32>
    %30 = vector.extract_strided_slice %14 {offsets = [0, 3], sizes = [16, 1], strides = [1, 1]} : vector<16x7xf32> to vector<16x1xf32>
    %31 = vector.extract_strided_slice %13 {offsets = [3, 0], sizes = [1, 16], strides = [1, 1]} : vector<7x16xf32> to vector<1x16xf32>
    %32 = vector.broadcast %30 : vector<16x1xf32> to vector<16x16xf32>
    %33 = vector.broadcast %31 : vector<1x16xf32> to vector<16x16xf32>
    %34 = arith.addf %32, %33 : vector<16x16xf32>
    %35 = vector.extract_strided_slice %14 {offsets = [0, 4], sizes = [16, 1], strides = [1, 1]} : vector<16x7xf32> to vector<16x1xf32>
    %36 = vector.extract_strided_slice %13 {offsets = [4, 0], sizes = [1, 16], strides = [1, 1]} : vector<7x16xf32> to vector<1x16xf32>
    %37 = vector.broadcast %35 : vector<16x1xf32> to vector<16x16xf32>
    %38 = vector.broadcast %36 : vector<1x16xf32> to vector<16x16xf32>
    %39 = arith.addf %37, %38 : vector<16x16xf32>
    %40 = vector.extract_strided_slice %14 {offsets = [0, 5], sizes = [16, 1], strides = [1, 1]} : vector<16x7xf32> to vector<16x1xf32>
    %41 = vector.extract_strided_slice %13 {offsets = [5, 0], sizes = [1, 16], strides = [1, 1]} : vector<7x16xf32> to vector<1x16xf32>
    %42 = vector.broadcast %40 : vector<16x1xf32> to vector<16x16xf32>
    %43 = vector.broadcast %41 : vector<1x16xf32> to vector<16x16xf32>
    %44 = arith.addf %42, %43 : vector<16x16xf32>
    %45 = vector.extract_strided_slice %14 {offsets = [0, 6], sizes = [16, 1], strides = [1, 1]} : vector<16x7xf32> to vector<16x1xf32>
    %46 = vector.extract_strided_slice %13 {offsets = [6, 0], sizes = [1, 16], strides = [1, 1]} : vector<7x16xf32> to vector<1x16xf32>
    %47 = vector.broadcast %45 : vector<16x1xf32> to vector<16x16xf32>
    %48 = vector.broadcast %46 : vector<1x16xf32> to vector<16x16xf32>
    %49 = arith.addf %47, %48 : vector<16x16xf32>
    %50 = tpu.concatenate %19, %24, %29, %34, %39, %44, %49 in 0 : vector<16x16xf32>, vector<16x16xf32>, vector<16x16xf32>, vector<16x16xf32>, vector<16x16xf32>, vector<16x16xf32>, vector<16x16xf32> -> vector<112x16xf32>
    %cst_13 = arith.constant 2.000000e-01 : f32
    %51 = vector.broadcast %cst_13 : f32 to vector<112x16xf32>
    %52 = arith.mulf %51, %50 : vector<112x16xf32>
    %53 = arith.maximumf %50, %52 : vector<112x16xf32>
    %54 = arith.addf %53, %6 : vector<112x16xf32>
    %cst_14 = arith.constant dense<0xFF800000> : vector<112xf32>
    %55 = vector.multi_reduction <maximumf>, %54, %cst_14 [1] : vector<112x16xf32> to vector<112xf32>
    %56 = vector.shape_cast %55 : vector<112xf32> to vector<112x1xf32>
    %57 = vector.broadcast %56 : vector<112x1xf32> to vector<112x16xf32>
    %58 = arith.subf %54, %57 : vector<112x16xf32>
    %59 = math.exp %58 : vector<112x16xf32>
    %cst_15 = arith.constant dense<0.000000e+00> : vector<112xf32>
    %60 = vector.multi_reduction <add>, %59, %cst_15 [1] : vector<112x16xf32> to vector<112xf32>
    %61 = vector.shape_cast %60 : vector<112xf32> to vector<112x1xf32>
    %62 = tpu.reciprocal %61 {approx = true} : vector<112x1xf32> -> vector<112x1xf32>
    %63 = vector.broadcast %62 : vector<112x1xf32> to vector<112x16xf32>
    %64 = arith.mulf %59, %63 : vector<112x16xf32>
    %65 = vector.extract_strided_slice %64 {offsets = [0, 0], sizes = [16, 16], strides = [1, 1]} : vector<112x16xf32> to vector<16x16xf32>
    %66 = vector.extract_strided_slice %12 {offsets = [0, 0], sizes = [16, 8], strides = [1, 1]} : vector<16x56xf32> to vector<16x8xf32>
    %cst_16 = arith.constant dense<0.000000e+00> : vector<16x8xf32>
    %67 = tpu.matmul %65, %66, %cst_16 {dimension_numbers = #tpu.dot_dimension_numbers<[1], [0], [0], [1], [0, 0, 1, 1], [], []>} : vector<16x16xf32>, vector<16x8xf32>, vector<16x8xf32> -> vector<16x8xf32>
    %68 = vector.extract_strided_slice %64 {offsets = [16, 0], sizes = [16, 16], strides = [1, 1]} : vector<112x16xf32> to vector<16x16xf32>
    %69 = vector.extract_strided_slice %12 {offsets = [0, 8], sizes = [16, 8], strides = [1, 1]} : vector<16x56xf32> to vector<16x8xf32>
    %cst_17 = arith.constant dense<0.000000e+00> : vector<16x8xf32>
    %70 = tpu.matmul %68, %69, %cst_17 {dimension_numbers = #tpu.dot_dimension_numbers<[1], [0], [0], [1], [0, 0, 1, 1], [], []>} : vector<16x16xf32>, vector<16x8xf32>, vector<16x8xf32> -> vector<16x8xf32>
    %71 = vector.extract_strided_slice %64 {offsets = [32, 0], sizes = [16, 16], strides = [1, 1]} : vector<112x16xf32> to vector<16x16xf32>
    %72 = vector.extract_strided_slice %12 {offsets = [0, 16], sizes = [16, 8], strides = [1, 1]} : vector<16x56xf32> to vector<16x8xf32>
    %cst_18 = arith.constant dense<0.000000e+00> : vector<16x8xf32>
    %73 = tpu.matmul %71, %72, %cst_18 {dimension_numbers = #tpu.dot_dimension_numbers<[1], [0], [0], [1], [0, 0, 1, 1], [], []>} : vector<16x16xf32>, vector<16x8xf32>, vector<16x8xf32> -> vector<16x8xf32>
    %74 = vector.extract_strided_slice %64 {offsets = [48, 0], sizes = [16, 16], strides = [1, 1]} : vector<112x16xf32> to vector<16x16xf32>
    %75 = vector.extract_strided_slice %12 {offsets = [0, 24], sizes = [16, 8], strides = [1, 1]} : vector<16x56xf32> to vector<16x8xf32>
    %cst_19 = arith.constant dense<0.000000e+00> : vector<16x8xf32>
    %76 = tpu.matmul %74, %75, %cst_19 {dimension_numbers = #tpu.dot_dimension_numbers<[1], [0], [0], [1], [0, 0, 1, 1], [], []>} : vector<16x16xf32>, vector<16x8xf32>, vector<16x8xf32> -> vector<16x8xf32>
    %77 = vector.extract_strided_slice %64 {offsets = [64, 0], sizes = [16, 16], strides = [1, 1]} : vector<112x16xf32> to vector<16x16xf32>
    %78 = vector.extract_strided_slice %12 {offsets = [0, 32], sizes = [16, 8], strides = [1, 1]} : vector<16x56xf32> to vector<16x8xf32>
    %cst_20 = arith.constant dense<0.000000e+00> : vector<16x8xf32>
    %79 = tpu.matmul %77, %78, %cst_20 {dimension_numbers = #tpu.dot_dimension_numbers<[1], [0], [0], [1], [0, 0, 1, 1], [], []>} : vector<16x16xf32>, vector<16x8xf32>, vector<16x8xf32> -> vector<16x8xf32>
    %80 = vector.extract_strided_slice %64 {offsets = [80, 0], sizes = [16, 16], strides = [1, 1]} : vector<112x16xf32> to vector<16x16xf32>
    %81 = vector.extract_strided_slice %12 {offsets = [0, 40], sizes = [16, 8], strides = [1, 1]} : vector<16x56xf32> to vector<16x8xf32>
    %cst_21 = arith.constant dense<0.000000e+00> : vector<16x8xf32>
    %82 = tpu.matmul %80, %81, %cst_21 {dimension_numbers = #tpu.dot_dimension_numbers<[1], [0], [0], [1], [0, 0, 1, 1], [], []>} : vector<16x16xf32>, vector<16x8xf32>, vector<16x8xf32> -> vector<16x8xf32>
    %83 = vector.extract_strided_slice %64 {offsets = [96, 0], sizes = [16, 16], strides = [1, 1]} : vector<112x16xf32> to vector<16x16xf32>
    %84 = vector.extract_strided_slice %12 {offsets = [0, 48], sizes = [16, 8], strides = [1, 1]} : vector<16x56xf32> to vector<16x8xf32>
    %cst_22 = arith.constant dense<0.000000e+00> : vector<16x8xf32>
    %85 = tpu.matmul %83, %84, %cst_22 {dimension_numbers = #tpu.dot_dimension_numbers<[1], [0], [0], [1], [0, 0, 1, 1], [], []>} : vector<16x16xf32>, vector<16x8xf32>, vector<16x8xf32> -> vector<16x8xf32>
    %86 = tpu.concatenate %67, %70, %73, %76, %79, %82, %85 in 1 : vector<16x8xf32>, vector<16x8xf32>, vector<16x8xf32>, vector<16x8xf32>, vector<16x8xf32>, vector<16x8xf32>, vector<16x8xf32> -> vector<16x56xf32>
    %87 = vector.broadcast %11 : vector<1x56xf32> to vector<16x56xf32>
    %88 = arith.addf %86, %87 : vector<16x56xf32>
    %cst_23 = arith.constant 0.000000e+00 : f32
    %89 = vector.broadcast %cst_23 : f32 to vector<16x56xf32>
    %90 = arith.maximumf %88, %89 : vector<16x56xf32>
    %c40 = arith.constant 40 : index
    %c0_24 = arith.constant 0 : index
    %91 = vector.load %arg2[%c40, %c0_24] : memref<192x56xf32, #tpu.memory_space<vmem>>, vector<56x48xf32>
    %c96 = arith.constant 96 : index
    %c0_25 = arith.constant 0 : index
    %92 = vector.load %arg2[%c96, %c0_25] : memref<192x56xf32, #tpu.memory_space<vmem>>, vector<6x48xf32>
    %c104 = arith.constant 104 : index
    %c0_26 = arith.constant 0 : index
    %93 = vector.load %arg2[%c104, %c0_26] : memref<192x56xf32, #tpu.memory_space<vmem>>, vector<6x48xf32>
    %c112 = arith.constant 112 : index
    %c0_27 = arith.constant 0 : index
    %94 = vector.load %arg2[%c112, %c0_27] : memref<192x56xf32, #tpu.memory_space<vmem>>, vector<1x48xf32>
    %cst_28 = arith.constant dense<0.000000e+00> : vector<16x48xf32>
    %95 = tpu.matmul %90, %91, %cst_28 {dimension_numbers = #tpu.dot_dimension_numbers<[1], [0], [0], [1], [0, 0, 1, 1], [], []>} : vector<16x56xf32>, vector<56x48xf32>, vector<16x48xf32> -> vector<16x48xf32>
    %cst_29 = arith.constant dense<0.000000e+00> : vector<6x16xf32>
    %96 = tpu.matmul %92, %95, %cst_29 {dimension_numbers = #tpu.dot_dimension_numbers<[1], [1], [0], [0], [0, 0, 1, 0], [], []>} : vector<6x48xf32>, vector<16x48xf32>, vector<6x16xf32> -> vector<6x16xf32>
    %cst_30 = arith.constant dense<0.000000e+00> : vector<16x6xf32>
    %97 = tpu.matmul %95, %93, %cst_30 {dimension_numbers = #tpu.dot_dimension_numbers<[1], [1], [0], [0], [0, 0, 1, 0], [], []>} : vector<16x48xf32>, vector<6x48xf32>, vector<16x6xf32> -> vector<16x6xf32>
    %98 = vector.extract_strided_slice %97 {offsets = [0, 0], sizes = [16, 1], strides = [1, 1]} : vector<16x6xf32> to vector<16x1xf32>
    %99 = vector.extract_strided_slice %96 {offsets = [0, 0], sizes = [1, 16], strides = [1, 1]} : vector<6x16xf32> to vector<1x16xf32>
    %100 = vector.broadcast %98 : vector<16x1xf32> to vector<16x16xf32>
    %101 = vector.broadcast %99 : vector<1x16xf32> to vector<16x16xf32>
    %102 = arith.addf %100, %101 : vector<16x16xf32>
    %103 = vector.extract_strided_slice %97 {offsets = [0, 1], sizes = [16, 1], strides = [1, 1]} : vector<16x6xf32> to vector<16x1xf32>
    %104 = vector.extract_strided_slice %96 {offsets = [1, 0], sizes = [1, 16], strides = [1, 1]} : vector<6x16xf32> to vector<1x16xf32>
    %105 = vector.broadcast %103 : vector<16x1xf32> to vector<16x16xf32>
    %106 = vector.broadcast %104 : vector<1x16xf32> to vector<16x16xf32>
    %107 = arith.addf %105, %106 : vector<16x16xf32>
    %108 = vector.extract_strided_slice %97 {offsets = [0, 2], sizes = [16, 1], strides = [1, 1]} : vector<16x6xf32> to vector<16x1xf32>
    %109 = vector.extract_strided_slice %96 {offsets = [2, 0], sizes = [1, 16], strides = [1, 1]} : vector<6x16xf32> to vector<1x16xf32>
    %110 = vector.broadcast %108 : vector<16x1xf32> to vector<16x16xf32>
    %111 = vector.broadcast %109 : vector<1x16xf32> to vector<16x16xf32>
    %112 = arith.addf %110, %111 : vector<16x16xf32>
    %113 = vector.extract_strided_slice %97 {offsets = [0, 3], sizes = [16, 1], strides = [1, 1]} : vector<16x6xf32> to vector<16x1xf32>
    %114 = vector.extract_strided_slice %96 {offsets = [3, 0], sizes = [1, 16], strides = [1, 1]} : vector<6x16xf32> to vector<1x16xf32>
    %115 = vector.broadcast %113 : vector<16x1xf32> to vector<16x16xf32>
    %116 = vector.broadcast %114 : vector<1x16xf32> to vector<16x16xf32>
    %117 = arith.addf %115, %116 : vector<16x16xf32>
    %118 = vector.extract_strided_slice %97 {offsets = [0, 4], sizes = [16, 1], strides = [1, 1]} : vector<16x6xf32> to vector<16x1xf32>
    %119 = vector.extract_strided_slice %96 {offsets = [4, 0], sizes = [1, 16], strides = [1, 1]} : vector<6x16xf32> to vector<1x16xf32>
    %120 = vector.broadcast %118 : vector<16x1xf32> to vector<16x16xf32>
    %121 = vector.broadcast %119 : vector<1x16xf32> to vector<16x16xf32>
    %122 = arith.addf %120, %121 : vector<16x16xf32>
    %123 = vector.extract_strided_slice %97 {offsets = [0, 5], sizes = [16, 1], strides = [1, 1]} : vector<16x6xf32> to vector<16x1xf32>
    %124 = vector.extract_strided_slice %96 {offsets = [5, 0], sizes = [1, 16], strides = [1, 1]} : vector<6x16xf32> to vector<1x16xf32>
    %125 = vector.broadcast %123 : vector<16x1xf32> to vector<16x16xf32>
    %126 = vector.broadcast %124 : vector<1x16xf32> to vector<16x16xf32>
    %127 = arith.addf %125, %126 : vector<16x16xf32>
    %128 = tpu.concatenate %102, %107, %112, %117, %122, %127 in 0 : vector<16x16xf32>, vector<16x16xf32>, vector<16x16xf32>, vector<16x16xf32>, vector<16x16xf32>, vector<16x16xf32> -> vector<96x16xf32>
    %cst_31 = arith.constant 2.000000e-01 : f32
    %129 = vector.broadcast %cst_31 : f32 to vector<96x16xf32>
    %130 = arith.mulf %129, %128 : vector<96x16xf32>
    %131 = arith.maximumf %128, %130 : vector<96x16xf32>
    %132 = vector.extract_strided_slice %6 {offsets = [0, 0], sizes = [96, 16], strides = [1, 1]} : vector<112x16xf32> to vector<96x16xf32>
    %133 = arith.addf %131, %132 : vector<96x16xf32>
    %cst_32 = arith.constant dense<0xFF800000> : vector<96xf32>
    %134 = vector.multi_reduction <maximumf>, %133, %cst_32 [1] : vector<96x16xf32> to vector<96xf32>
    %135 = vector.shape_cast %134 : vector<96xf32> to vector<96x1xf32>
    %136 = vector.broadcast %135 : vector<96x1xf32> to vector<96x16xf32>
    %137 = arith.subf %133, %136 : vector<96x16xf32>
    %138 = math.exp %137 : vector<96x16xf32>
    %cst_33 = arith.constant dense<0.000000e+00> : vector<96xf32>
    %139 = vector.multi_reduction <add>, %138, %cst_33 [1] : vector<96x16xf32> to vector<96xf32>
    %140 = vector.shape_cast %139 : vector<96xf32> to vector<96x1xf32>
    %141 = tpu.reciprocal %140 {approx = true} : vector<96x1xf32> -> vector<96x1xf32>
    %142 = vector.broadcast %141 : vector<96x1xf32> to vector<96x16xf32>
    %143 = arith.mulf %138, %142 : vector<96x16xf32>
    %144 = vector.extract_strided_slice %143 {offsets = [0, 0], sizes = [16, 16], strides = [1, 1]} : vector<96x16xf32> to vector<16x16xf32>
    %145 = vector.extract_strided_slice %95 {offsets = [0, 0], sizes = [16, 8], strides = [1, 1]} : vector<16x48xf32> to vector<16x8xf32>
    %cst_34 = arith.constant dense<0.000000e+00> : vector<16x8xf32>
    %146 = tpu.matmul %144, %145, %cst_34 {dimension_numbers = #tpu.dot_dimension_numbers<[1], [0], [0], [1], [0, 0, 1, 1], [], []>} : vector<16x16xf32>, vector<16x8xf32>, vector<16x8xf32> -> vector<16x8xf32>
    %147 = vector.extract_strided_slice %143 {offsets = [16, 0], sizes = [16, 16], strides = [1, 1]} : vector<96x16xf32> to vector<16x16xf32>
    %148 = vector.extract_strided_slice %95 {offsets = [0, 8], sizes = [16, 8], strides = [1, 1]} : vector<16x48xf32> to vector<16x8xf32>
    %cst_35 = arith.constant dense<0.000000e+00> : vector<16x8xf32>
    %149 = tpu.matmul %147, %148, %cst_35 {dimension_numbers = #tpu.dot_dimension_numbers<[1], [0], [0], [1], [0, 0, 1, 1], [], []>} : vector<16x16xf32>, vector<16x8xf32>, vector<16x8xf32> -> vector<16x8xf32>
    %150 = vector.extract_strided_slice %143 {offsets = [32, 0], sizes = [16, 16], strides = [1, 1]} : vector<96x16xf32> to vector<16x16xf32>
    %151 = vector.extract_strided_slice %95 {offsets = [0, 16], sizes = [16, 8], strides = [1, 1]} : vector<16x48xf32> to vector<16x8xf32>
    %cst_36 = arith.constant dense<0.000000e+00> : vector<16x8xf32>
    %152 = tpu.matmul %150, %151, %cst_36 {dimension_numbers = #tpu.dot_dimension_numbers<[1], [0], [0], [1], [0, 0, 1, 1], [], []>} : vector<16x16xf32>, vector<16x8xf32>, vector<16x8xf32> -> vector<16x8xf32>
    %153 = vector.extract_strided_slice %143 {offsets = [48, 0], sizes = [16, 16], strides = [1, 1]} : vector<96x16xf32> to vector<16x16xf32>
    %154 = vector.extract_strided_slice %95 {offsets = [0, 24], sizes = [16, 8], strides = [1, 1]} : vector<16x48xf32> to vector<16x8xf32>
    %cst_37 = arith.constant dense<0.000000e+00> : vector<16x8xf32>
    %155 = tpu.matmul %153, %154, %cst_37 {dimension_numbers = #tpu.dot_dimension_numbers<[1], [0], [0], [1], [0, 0, 1, 1], [], []>} : vector<16x16xf32>, vector<16x8xf32>, vector<16x8xf32> -> vector<16x8xf32>
    %156 = vector.extract_strided_slice %143 {offsets = [64, 0], sizes = [16, 16], strides = [1, 1]} : vector<96x16xf32> to vector<16x16xf32>
    %157 = vector.extract_strided_slice %95 {offsets = [0, 32], sizes = [16, 8], strides = [1, 1]} : vector<16x48xf32> to vector<16x8xf32>
    %cst_38 = arith.constant dense<0.000000e+00> : vector<16x8xf32>
    %158 = tpu.matmul %156, %157, %cst_38 {dimension_numbers = #tpu.dot_dimension_numbers<[1], [0], [0], [1], [0, 0, 1, 1], [], []>} : vector<16x16xf32>, vector<16x8xf32>, vector<16x8xf32> -> vector<16x8xf32>
    %159 = vector.extract_strided_slice %143 {offsets = [80, 0], sizes = [16, 16], strides = [1, 1]} : vector<96x16xf32> to vector<16x16xf32>
    %160 = vector.extract_strided_slice %95 {offsets = [0, 40], sizes = [16, 8], strides = [1, 1]} : vector<16x48xf32> to vector<16x8xf32>
    %cst_39 = arith.constant dense<0.000000e+00> : vector<16x8xf32>
    %161 = tpu.matmul %159, %160, %cst_39 {dimension_numbers = #tpu.dot_dimension_numbers<[1], [0], [0], [1], [0, 0, 1, 1], [], []>} : vector<16x16xf32>, vector<16x8xf32>, vector<16x8xf32> -> vector<16x8xf32>
    %162 = tpu.concatenate %146, %149, %152, %155, %158, %161 in 1 : vector<16x8xf32>, vector<16x8xf32>, vector<16x8xf32>, vector<16x8xf32>, vector<16x8xf32>, vector<16x8xf32> -> vector<16x48xf32>
    %163 = vector.broadcast %94 : vector<1x48xf32> to vector<16x48xf32>
    %164 = arith.addf %162, %163 : vector<16x48xf32>
    %cst_40 = arith.constant 0.000000e+00 : f32
    %165 = vector.broadcast %cst_40 : f32 to vector<16x48xf32>
    %166 = arith.maximumf %164, %165 : vector<16x48xf32>
    %c120 = arith.constant 120 : index
    %c0_41 = arith.constant 0 : index
    %167 = vector.load %arg2[%c120, %c0_41] : memref<192x56xf32, #tpu.memory_space<vmem>>, vector<48x24xf32>
    %c168 = arith.constant 168 : index
    %c0_42 = arith.constant 0 : index
    %168 = vector.load %arg2[%c168, %c0_42] : memref<192x56xf32, #tpu.memory_space<vmem>>, vector<6x24xf32>
    %c176 = arith.constant 176 : index
    %c0_43 = arith.constant 0 : index
    %169 = vector.load %arg2[%c176, %c0_43] : memref<192x56xf32, #tpu.memory_space<vmem>>, vector<6x24xf32>
    %c184 = arith.constant 184 : index
    %c0_44 = arith.constant 0 : index
    %170 = vector.load %arg2[%c184, %c0_44] : memref<192x56xf32, #tpu.memory_space<vmem>>, vector<1x24xf32>
    %cst_45 = arith.constant dense<0.000000e+00> : vector<16x24xf32>
    %171 = tpu.matmul %166, %167, %cst_45 {dimension_numbers = #tpu.dot_dimension_numbers<[1], [0], [0], [1], [0, 0, 1, 1], [], []>} : vector<16x48xf32>, vector<48x24xf32>, vector<16x24xf32> -> vector<16x24xf32>
    %cst_46 = arith.constant dense<0.000000e+00> : vector<6x16xf32>
    %172 = tpu.matmul %168, %171, %cst_46 {dimension_numbers = #tpu.dot_dimension_numbers<[1], [1], [0], [0], [0, 0, 1, 0], [], []>} : vector<6x24xf32>, vector<16x24xf32>, vector<6x16xf32> -> vector<6x16xf32>
    %cst_47 = arith.constant dense<0.000000e+00> : vector<16x6xf32>
    %173 = tpu.matmul %171, %169, %cst_47 {dimension_numbers = #tpu.dot_dimension_numbers<[1], [1], [0], [0], [0, 0, 1, 0], [], []>} : vector<16x24xf32>, vector<6x24xf32>, vector<16x6xf32> -> vector<16x6xf32>
    %174 = vector.extract_strided_slice %173 {offsets = [0, 0], sizes = [16, 1], strides = [1, 1]} : vector<16x6xf32> to vector<16x1xf32>
    %175 = vector.extract_strided_slice %172 {offsets = [0, 0], sizes = [1, 16], strides = [1, 1]} : vector<6x16xf32> to vector<1x16xf32>
    %176 = vector.broadcast %174 : vector<16x1xf32> to vector<16x16xf32>
    %177 = vector.broadcast %175 : vector<1x16xf32> to vector<16x16xf32>
    %178 = arith.addf %176, %177 : vector<16x16xf32>
    %179 = vector.extract_strided_slice %173 {offsets = [0, 1], sizes = [16, 1], strides = [1, 1]} : vector<16x6xf32> to vector<16x1xf32>
    %180 = vector.extract_strided_slice %172 {offsets = [1, 0], sizes = [1, 16], strides = [1, 1]} : vector<6x16xf32> to vector<1x16xf32>
    %181 = vector.broadcast %179 : vector<16x1xf32> to vector<16x16xf32>
    %182 = vector.broadcast %180 : vector<1x16xf32> to vector<16x16xf32>
    %183 = arith.addf %181, %182 : vector<16x16xf32>
    %184 = vector.extract_strided_slice %173 {offsets = [0, 2], sizes = [16, 1], strides = [1, 1]} : vector<16x6xf32> to vector<16x1xf32>
    %185 = vector.extract_strided_slice %172 {offsets = [2, 0], sizes = [1, 16], strides = [1, 1]} : vector<6x16xf32> to vector<1x16xf32>
    %186 = vector.broadcast %184 : vector<16x1xf32> to vector<16x16xf32>
    %187 = vector.broadcast %185 : vector<1x16xf32> to vector<16x16xf32>
    %188 = arith.addf %186, %187 : vector<16x16xf32>
    %189 = vector.extract_strided_slice %173 {offsets = [0, 3], sizes = [16, 1], strides = [1, 1]} : vector<16x6xf32> to vector<16x1xf32>
    %190 = vector.extract_strided_slice %172 {offsets = [3, 0], sizes = [1, 16], strides = [1, 1]} : vector<6x16xf32> to vector<1x16xf32>
    %191 = vector.broadcast %189 : vector<16x1xf32> to vector<16x16xf32>
    %192 = vector.broadcast %190 : vector<1x16xf32> to vector<16x16xf32>
    %193 = arith.addf %191, %192 : vector<16x16xf32>
    %194 = vector.extract_strided_slice %173 {offsets = [0, 4], sizes = [16, 1], strides = [1, 1]} : vector<16x6xf32> to vector<16x1xf32>
    %195 = vector.extract_strided_slice %172 {offsets = [4, 0], sizes = [1, 16], strides = [1, 1]} : vector<6x16xf32> to vector<1x16xf32>
    %196 = vector.broadcast %194 : vector<16x1xf32> to vector<16x16xf32>
    %197 = vector.broadcast %195 : vector<1x16xf32> to vector<16x16xf32>
    %198 = arith.addf %196, %197 : vector<16x16xf32>
    %199 = vector.extract_strided_slice %173 {offsets = [0, 5], sizes = [16, 1], strides = [1, 1]} : vector<16x6xf32> to vector<16x1xf32>
    %200 = vector.extract_strided_slice %172 {offsets = [5, 0], sizes = [1, 16], strides = [1, 1]} : vector<6x16xf32> to vector<1x16xf32>
    %201 = vector.broadcast %199 : vector<16x1xf32> to vector<16x16xf32>
    %202 = vector.broadcast %200 : vector<1x16xf32> to vector<16x16xf32>
    %203 = arith.addf %201, %202 : vector<16x16xf32>
    %204 = tpu.concatenate %178, %183, %188, %193, %198, %203 in 0 : vector<16x16xf32>, vector<16x16xf32>, vector<16x16xf32>, vector<16x16xf32>, vector<16x16xf32>, vector<16x16xf32> -> vector<96x16xf32>
    %cst_48 = arith.constant 2.000000e-01 : f32
    %205 = vector.broadcast %cst_48 : f32 to vector<96x16xf32>
    %206 = arith.mulf %205, %204 : vector<96x16xf32>
    %207 = arith.maximumf %204, %206 : vector<96x16xf32>
    %208 = vector.extract_strided_slice %6 {offsets = [0, 0], sizes = [96, 16], strides = [1, 1]} : vector<112x16xf32> to vector<96x16xf32>
    %209 = arith.addf %207, %208 : vector<96x16xf32>
    %cst_49 = arith.constant dense<0xFF800000> : vector<96xf32>
    %210 = vector.multi_reduction <maximumf>, %209, %cst_49 [1] : vector<96x16xf32> to vector<96xf32>
    %211 = vector.shape_cast %210 : vector<96xf32> to vector<96x1xf32>
    %212 = vector.broadcast %211 : vector<96x1xf32> to vector<96x16xf32>
    %213 = arith.subf %209, %212 : vector<96x16xf32>
    %214 = math.exp %213 : vector<96x16xf32>
    %cst_50 = arith.constant dense<0.000000e+00> : vector<96xf32>
    %215 = vector.multi_reduction <add>, %214, %cst_50 [1] : vector<96x16xf32> to vector<96xf32>
    %216 = vector.shape_cast %215 : vector<96xf32> to vector<96x1xf32>
    %217 = tpu.reciprocal %216 {approx = true} : vector<96x1xf32> -> vector<96x1xf32>
    %218 = vector.broadcast %217 : vector<96x1xf32> to vector<96x16xf32>
    %219 = arith.mulf %214, %218 : vector<96x16xf32>
    %220 = vector.extract_strided_slice %219 {offsets = [0, 0], sizes = [16, 16], strides = [1, 1]} : vector<96x16xf32> to vector<16x16xf32>
    %221 = vector.extract_strided_slice %171 {offsets = [0, 0], sizes = [16, 4], strides = [1, 1]} : vector<16x24xf32> to vector<16x4xf32>
    %cst_51 = arith.constant dense<0.000000e+00> : vector<16x4xf32>
    %222 = tpu.matmul %220, %221, %cst_51 {dimension_numbers = #tpu.dot_dimension_numbers<[1], [0], [0], [1], [0, 0, 1, 1], [], []>} : vector<16x16xf32>, vector<16x4xf32>, vector<16x4xf32> -> vector<16x4xf32>
    %223 = vector.extract_strided_slice %219 {offsets = [16, 0], sizes = [16, 16], strides = [1, 1]} : vector<96x16xf32> to vector<16x16xf32>
    %224 = vector.extract_strided_slice %171 {offsets = [0, 4], sizes = [16, 4], strides = [1, 1]} : vector<16x24xf32> to vector<16x4xf32>
    %cst_52 = arith.constant dense<0.000000e+00> : vector<16x4xf32>
    %225 = tpu.matmul %223, %224, %cst_52 {dimension_numbers = #tpu.dot_dimension_numbers<[1], [0], [0], [1], [0, 0, 1, 1], [], []>} : vector<16x16xf32>, vector<16x4xf32>, vector<16x4xf32> -> vector<16x4xf32>
    %226 = vector.extract_strided_slice %219 {offsets = [32, 0], sizes = [16, 16], strides = [1, 1]} : vector<96x16xf32> to vector<16x16xf32>
    %227 = vector.extract_strided_slice %171 {offsets = [0, 8], sizes = [16, 4], strides = [1, 1]} : vector<16x24xf32> to vector<16x4xf32>
    %cst_53 = arith.constant dense<0.000000e+00> : vector<16x4xf32>
    %228 = tpu.matmul %226, %227, %cst_53 {dimension_numbers = #tpu.dot_dimension_numbers<[1], [0], [0], [1], [0, 0, 1, 1], [], []>} : vector<16x16xf32>, vector<16x4xf32>, vector<16x4xf32> -> vector<16x4xf32>
    %229 = vector.extract_strided_slice %219 {offsets = [48, 0], sizes = [16, 16], strides = [1, 1]} : vector<96x16xf32> to vector<16x16xf32>
    %230 = vector.extract_strided_slice %171 {offsets = [0, 12], sizes = [16, 4], strides = [1, 1]} : vector<16x24xf32> to vector<16x4xf32>
    %cst_54 = arith.constant dense<0.000000e+00> : vector<16x4xf32>
    %231 = tpu.matmul %229, %230, %cst_54 {dimension_numbers = #tpu.dot_dimension_numbers<[1], [0], [0], [1], [0, 0, 1, 1], [], []>} : vector<16x16xf32>, vector<16x4xf32>, vector<16x4xf32> -> vector<16x4xf32>
    %232 = vector.extract_strided_slice %219 {offsets = [64, 0], sizes = [16, 16], strides = [1, 1]} : vector<96x16xf32> to vector<16x16xf32>
    %233 = vector.extract_strided_slice %171 {offsets = [0, 16], sizes = [16, 4], strides = [1, 1]} : vector<16x24xf32> to vector<16x4xf32>
    %cst_55 = arith.constant dense<0.000000e+00> : vector<16x4xf32>
    %234 = tpu.matmul %232, %233, %cst_55 {dimension_numbers = #tpu.dot_dimension_numbers<[1], [0], [0], [1], [0, 0, 1, 1], [], []>} : vector<16x16xf32>, vector<16x4xf32>, vector<16x4xf32> -> vector<16x4xf32>
    %235 = vector.extract_strided_slice %219 {offsets = [80, 0], sizes = [16, 16], strides = [1, 1]} : vector<96x16xf32> to vector<16x16xf32>
    %236 = vector.extract_strided_slice %171 {offsets = [0, 20], sizes = [16, 4], strides = [1, 1]} : vector<16x24xf32> to vector<16x4xf32>
    %cst_56 = arith.constant dense<0.000000e+00> : vector<16x4xf32>
    %237 = tpu.matmul %235, %236, %cst_56 {dimension_numbers = #tpu.dot_dimension_numbers<[1], [0], [0], [1], [0, 0, 1, 1], [], []>} : vector<16x16xf32>, vector<16x4xf32>, vector<16x4xf32> -> vector<16x4xf32>
    %238 = tpu.concatenate %222, %225, %228, %231, %234, %237 in 1 : vector<16x4xf32>, vector<16x4xf32>, vector<16x4xf32>, vector<16x4xf32>, vector<16x4xf32>, vector<16x4xf32> -> vector<16x24xf32>
    %239 = vector.broadcast %170 : vector<1x24xf32> to vector<16x24xf32>
    %240 = arith.addf %238, %239 : vector<16x24xf32>
    %c0_57 = arith.constant 0 : index
    %c0_58 = arith.constant 0 : index
    %241 = vector.load %arg3[%c0_57, %c0_58] : memref<16x24xf32, #tpu.memory_space<vmem>>, vector<16x24xf32>
    tpu.vector_store %arg3[%c0_57, %c0_58], %240 {strides = array<i32>} : memref<16x24xf32, #tpu.memory_space<vmem>>, vector<16x24xf32>,
    return
  }
}

</mosaic_0001>

<bundles_post_ra>
// kernel: tpu_custom_call.1
= control target key start
LH: loop header
LB: loop body
LE: loop exit
PB: predicated region body
PF: predicated region fallthrough
CT: control target
= control target key end

     0   :  { %vm28_vm0 = vcmask 130048   ;;  %s4985_s0 = inlined_call_operand.vmem [shape: f32[16,16], index: 0, kind: input, shape index: {}]   ;;  %s4986_s1 = inlined_call_operand.vmem [shape: f32[16,16], index: 1, kind: input, shape index: {}]   ;;  %s4987_s2 = inlined_call_operand.vmem [shape: f32[192,56], index: 2, kind: input, shape index: {}]   ;;  %s4988_s3 = inlined_call_operand.hbm [shape: f32[16,24], index: 3, kind: output, shape index: {}]  }
   0x1   :  { %v24_v0 = vld [vmem:[%s4987_s2 + $0x8] sm:$0xff]  ;;  %v23_v1 = vld [vmem:[%s4987_s2] sm:$0xff] }
   0x2   :  { %v21_v2 = vld [vmem:[%s4985_s0] sm:$0xff]  ;;  %3590 = vmatprep.subr.mxu0 %v24_v0 }
   0x3   :  { %3594 = vmatprep.mubr.msk.f32.mxu0 %vm28_vm0, %v21_v2 }
   0x4   :  { %8 = vsyncpa [#allocation3], 0  ;;  %3591 = vmatpush3.msra.mxu0 %v24_v0  ;;  %v22_v3 = vld [vmem:[%s4985_s0 + $0x8] sm:$0xff]  ;;  %v26_v4 = vld [vmem:[%s4987_s2 + $0x18] sm:$0x7f]  ;;  %vm110_vm1 = vcmask 457728   ;;  %v278_v20 = vlaneseq }
   0x5   :  { %3592 = vmatprep.subr.mxu0 %v23_v1  ;;  %v4041_v5 = vmov 0.0   ;;  %vm4042_vm2 = vmmov 0   ;;  %v4043_v6 = vmov 1   ;;  %v4044_v7 = vmov 0   ;;  %v25_v10 = vld [vmem:[%s4987_s2 + $0x10] sm:$0x7f] }
   0x6   :  { %3593 = vmatpush3.msra.mxu0 %v23_v1  ;;  %3597 = vmatprep.subr.mxu1 %v4041_v5  ;;  %v4045_v13 = vmov 2   ;;  %v4046_v14 = vmov 3   ;;  %v4047_v17 = vmov 4   ;;  %v4048_v18 = vmov 5   ;;  %s4050_s23 = smov 112   ;;  %s4051_s24 = smov 120  }
   0x7   :  { %3595 = vmatmul.mubr.msk.f32.vlgmr.msra.gmra.mxu0 %vm28_vm0, %v22_v3  ;;  %3604 = vmatprep.subr.msk.mxu0 %vm110_vm1, %v26_v4  ;;  %v4049_v19 = vmov 6   ;;  %s4052_s25 = smov 96   ;;  %v4160_v21 = vshrl.u32 %v278_v20, 7  ;;  %v16_v28 = vld [vmem:[%s4986_s1 + $0x8] sm:$0xff]  ;;  %v4053_v38 = vmov -1e+09  }
   0x8   :  { %3605 = vmatpush3.xpose.msk.msra.mxu0 %vm110_vm1, %v26_v4  ;;  %3601 = vmatprep.mubr.msk.f32.mxu1 %vm4042_vm2, %v4041_v5  ;;  %vm18_vm3 = vcmp.gt.f32.partialorder %v16_v28, 0.0  ;;  %v15_v51 = vld [vmem:[%s4986_s1] sm:$0xff]  ;;  %s4054_s1 = smov 104   ;;  %s4055_s30 = smov 88   ;;  %vm1215_vm5 = vcmask 64512   ;;  %vm1220_vm6 = vcmask 195584  }
   0x9   :  { %3829 = vset.pattern.permute.xlu1 %v4043_v6  ;;  %3828 = vset.pattern.permute.xlu0 %v4044_v7  ;;  %v4163_v22 = vsub.s32 1, %v4160_v21  ;;  %v4166_v23 = vsub.s32 0, %v4160_v21  ;;  %v4175_v26 = vsub.s32 2, %v4160_v21  ;;  %v4178_v27 = vsub.s32 3, %v4160_v21  ;;  %s4056_s4 = smov 80   ;;  %s4057_s5 = smov 8  }
   0xa   :  { %v4191_v37 = vsub.s32 4, %v4160_v21  ;;  %v4193_v39 = vsel %vm18_vm3, 0.0, %v4053_v38  ;;  %v4207_v50 = vsub.s32 5, %v4160_v21  ;;  %vm17_vm4 = vcmp.gt.f32.partialorder %v15_v51, 0.0  ;;  %s4058_s10 = smov 16   ;;  %s4059_s15 = smov 24  }
   0xb   :  { %v4222_v1 = vsel %vm17_vm4, 0.0, %v4053_v38  ;;  %s4060_s20 = smov 32   ;;  %s4061_s22 = smov 40   ;;  %vm1223_vm7 = vcmask 261120   ;;  %vm1226_vm8 = vcmask 326656   ;;  %vm1229_vm9 = vcmask 392192  }
   0xc   :  { %s4062_s26 = smov 48   ;;  %s4065_s27 = smov 108   ;;  %vm3373_vm10 = vcmask 31744   ;;  %vm3378_vm11 = vcmask 97280   ;;  %vm3383_vm12 = vcmask 162816  }
   0xd   :  { %s4067_s28 = smov 12   ;;  %s4068_s29 = smov 20  }
   0xe   :  { %s4069_s6 = smov [#allocation2]  }
   0xf   :  { %s3399_s7 = sshll.u32 %s4069_s6, 4  ;;  %s3400_s7 = int_to_ptr.vmem [resolvable:$true] %s3399_s7 }
  0x10   :  { %p4024_p1 = scmp.lt.s32.totalorder %s3400_s7, %s3400_s7 }
  0xc7   :  { %v4115_v8 = vpop.f32.mrf.mxu0 }
  0xc8   :  { %3598 = vmatpush3.xpose.msk.msra.mxu1 %vm110_vm1, %v4115_v8  ;;  %3609 = vmatprep.subr.mxu0 %v4115_v8 }
  0xc9   :  { %v4120_v9 = vpop.f32.mrf.mxu0  ;;  %3599 = vmatprep.subr.mxu1 %v4041_v5 }
  0xca   :  { %3606 = vmatprep.mubr.msk.f32.mxu0 %vm110_vm1, %v4120_v9 }
  0xcb   :  { %3607 = vmatmul.mubr.msk.f32.vlgmr.msra.gmra.mxu0 %vm110_vm1, %v4115_v8 }
  0xcc   :  { %3610 = vmatpush3.msra.mxu0 %v4115_v8  ;;  %3600 = vmatpush3.xpose.msk.msra.mxu1 %vm110_vm1, %v4120_v9 }
  0xcd   :  { %3611 = vmatprep.subr.mxu0 %v4120_v9 }
  0xce   :  { %3612 = vmatpush3.msra.mxu0 %v4120_v9 }
  0xcf   :  { %3602 = vmatmul.mubr.msk.f32.vlgmr.msra.gmra.mxu1 %vm110_vm1, %v25_v10 }
 0x18b   :  { %v3608_v11 = vpop.f32.mrf.mxu0 }
 0x18c   :  { %289 = vperm.xlu1 %3829, %v3608_v11   ;;  %275 = vperm.xlu0 %3828, %v3608_v11  }
 0x18d   :  { %v259_v16 = vpop.f32.mrf.mxu0 }
 0x18f   :  { %v4136_v12 = vpop.f32.mrf.mxu1 }
 0x190   :  { %3830 = vset.pattern.permute.xlu1 %v4045_v13  ;;  %3831 = vset.pattern.permute.xlu0 %v4046_v14  ;;  %v4170_v24 = vrot.slane %v4136_v12, %v4163_v22  ;;  %v281_v25 = vrot.slane %v4136_v12, %v4166_v23  ;;  %v309_v33 = vrot.slane %v4136_v12, %v4175_v26 }
 0x191   :  { %303 = vperm.xlu1 %3830, %v3608_v11   ;;  %317 = vperm.xlu0 %3831, %v3608_v11   ;;  %v3603_v15 = vpop.f32.mrf.mxu1  ;;  %v4188_v34 = vrot.slane %v4136_v12, %v4178_v27  ;;  %v4198_v46 = vrot.slane %v4136_v12, %v4191_v37  ;;  %v351_v60 = vrot.slane %v4136_v12, %v4207_v50 }
 0x195   :  { %3832 = vset.pattern.permute.xlu1 %v4047_v17  ;;  %3834 = vset.pattern.permute.xlu0 %v4044_v7 }
 0x196   :  { %331 = vperm.xlu1 %3832, %v3608_v11   ;;  %270 = vperm.xlu0 %3834, %v259_v16  }
 0x19a   :  { %3833 = vset.pattern.permute.xlu1 %v4048_v18  ;;  %3836 = vset.pattern.permute.xlu0 %v4045_v13 }
 0x19b   :  { %345 = vperm.xlu1 %3833, %v3608_v11   ;;  %299 = vperm.xlu0 %3836, %v259_v16  }
 0x19f   :  { %3835 = vset.pattern.permute.xlu1 %v4043_v6  ;;  %3839 = vset.pattern.permute.xlu0 %v4048_v18 }
 0x1a0   :  { %285 = vperm.xlu1 %3835, %v259_v16   ;;  %341 = vperm.xlu0 %3839, %v259_v16  }
 0x1a4   :  { %3837 = vset.pattern.permute.xlu1 %v4046_v14  ;;  %3841 = vset.pattern.permute.xlu0 %v4049_v19 }
 0x1a5   :  { %313 = vperm.xlu1 %3837, %v259_v16   ;;  %359 = vperm.xlu0 %3841, %v3608_v11  }
 0x1a9   :  { %3838 = vset.pattern.permute.xlu1 %v4047_v17  ;;  %734 = vrot.lane.b32.xlu0 %v4115_v8, %s4050_s23 }
 0x1aa   :  { %327 = vperm.xlu1 %3838, %v259_v16   ;;  %3843 = vset.pattern.permute.xlu0 %v4043_v6 }
 0x1ae   :  { %3840 = vset.pattern.permute.xlu1 %v4049_v19 }
 0x1af   :  { %355 = vperm.xlu1 %3840, %v259_v16  }
 0x1b3   :  { %647 = vrot.lane.b32.xlu1 %v4115_v8, %s4051_s24 }
 0x1b4   :  { %3842 = vset.pattern.permute.xlu1 %v4044_v7 }
 0x1b7   :  { %645 = vrot.lane.b32.xlu1 %v4120_v9, %s4051_s24 }
 0x1bb   :  { %732 = vrot.lane.b32.xlu1 %v4120_v9, %s4050_s23 }
 0x1bf   :  { %908 = vrot.lane.b32.xlu1 %v4115_v8, %s4052_s25 }
 0x207   :  { %v290_v29 = vpop.permute.xlu1 %289  ;;  %v276_v30 = vpop.permute.xlu0 %275 }
 0x208   :  { %v297_v31 = vadd.f32 %v4170_v24, %v290_v29  ;;  %v283_v32 = vadd.f32 %v281_v25, %v276_v30 }
 0x20a   :  { %v371_v35 = vmul.f32 0.2, %v297_v31  ;;  %v369_v36 = vmul.f32 0.2, %v283_v32 }
 0x20c   :  { %v385_v40 = vmax.f32 %v297_v31, %v371_v35  ;;  %v383_v41 = vmax.f32 %v283_v32, %v369_v36  ;;  %v304_v42 = vpop.permute.xlu1 %303  ;;  %v318_v43 = vpop.permute.xlu0 %317  ;;  %v364_v31 = vsub.s32 6, %v4160_v21 }
 0x20d   :  { %v311_v44 = vadd.f32 %v309_v33, %v304_v42  ;;  %v325_v45 = vadd.f32 %v4188_v34, %v318_v43 }
 0x20e   :  { %v4201_v47 = vadd.f32 %v383_v41, %v4193_v39  ;;  %v4204_v49 = vadd.f32 %v385_v40, %v4193_v39  ;;  %v365_v41 = vrot.slane %v4136_v12, %v364_v31 }
 0x20f   :  { %v373_v48 = vmul.f32 0.2, %v311_v44  ;;  %v375_v52 = vmul.f32 0.2, %v325_v45 }
 0x210   :  { %v413_v53 = vsel %vm28_vm0, %v4201_v47, -inf  ;;  %v419_v59 = vsel %vm28_vm0, %v4204_v49, -inf }
 0x211   :  { %v387_v54 = vmax.f32 %v311_v44, %v373_v48  ;;  %v332_v55 = vpop.permute.xlu1 %331  ;;  %v271_v56 = vpop.permute.xlu0 %270  ;;  %414 = vmax.xlane.f32.xlu0 %v413_v53  ;;  %v389_v61 = vmax.f32 %v325_v45, %v375_v52 }
 0x212   :  { %v339_v57 = vadd.f32 %v4198_v46, %v332_v55  ;;  %v282_v58 = vadd.f32 %v281_v25, %v271_v56 }
 0x213   :  { %v4220_v0 = vadd.f32 %v387_v54, %v4193_v39  ;;  %v4230_v19 = vadd.f32 %v389_v61, %v4193_v39 }
 0x214   :  { %v377_v62 = vmul.f32 0.2, %v339_v57  ;;  %v368_v63 = vmul.f32 0.2, %v282_v58 }
 0x215   :  { %420 = vmax.xlane.f32.xlu0 %v419_v59  ;;  %v425_v15 = vsel %vm28_vm0, %v4220_v0, -inf  ;;  %v431_v36 = vsel %vm28_vm0, %v4230_v19, -inf }
 0x216   :  { %v382_v2 = vmax.f32 %v282_v58, %v368_v63  ;;  %v346_v3 = vpop.permute.xlu1 %345  ;;  %v300_v4 = vpop.permute.xlu0 %299  ;;  %v391_v11 = vmax.f32 %v339_v57, %v377_v62 }
 0x217   :  { %v353_v10 = vadd.f32 %v351_v60, %v346_v3  ;;  %v310_v25 = vadd.f32 %v309_v33, %v300_v4 }
 0x218   :  { %v4227_v16 = vadd.f32 %v382_v2, %v4222_v1  ;;  %v4239_v38 = vadd.f32 %v391_v11, %v4193_v39 }
 0x219   :  { %v379_v20 = vmul.f32 0.2, %v353_v10  ;;  %426 = vmax.xlane.f32.xlu0 %v425_v15  ;;  %v372_v40 = vmul.f32 0.2, %v310_v25 }
 0x21a   :  { %v410_v28 = vsel %vm28_vm0, %v4227_v16, -inf  ;;  %v437_v21 = vsel %vm28_vm0, %v4239_v38, -inf }
 0x21b   :  { %v286_v29 = vpop.permute.xlu1 %285  ;;  %v342_v30 = vpop.permute.xlu0 %341  ;;  %411 = vmax.xlane.f32.xlu1 %v410_v28  ;;  %v393_v32 = vmax.f32 %v353_v10, %v379_v20 }
 0x21c   :  { %v296_v35 = vadd.f32 %v4170_v24, %v286_v29  ;;  %v386_v24 = vmax.f32 %v310_v25, %v372_v40  ;;  %v352_v12 = vadd.f32 %v351_v60, %v342_v30 }
 0x21d   :  { %432 = vmax.xlane.f32.xlu0 %v431_v36  ;;  %v4245_v45 = vadd.f32 %v393_v32, %v4193_v39 }
 0x21e   :  { %v370_v33 = vmul.f32 0.2, %v296_v35  ;;  %v378_v2 = vmul.f32 0.2, %v352_v12 }
 0x21f   :  { %v443_v56 = vsel %vm28_vm0, %v4245_v45, -inf }
 0x220   :  { %v384_v42 = vmax.f32 %v296_v35, %v370_v33  ;;  %v314_v43 = vpop.permute.xlu1 %313  ;;  %v360_v44 = vpop.permute.xlu0 %359  ;;  %v392_v20 = vmax.f32 %v352_v12, %v378_v2 }
 0x221   :  { %v324_v48 = vadd.f32 %v4188_v34, %v314_v43  ;;  %v367_v51 = vadd.f32 %v365_v41, %v360_v44  ;;  %438 = vmax.xlane.f32.xlu0 %v437_v21  ;;  %v4259_v34 = vadd.f32 %v386_v24, %v4222_v1 }
 0x222   :  { %v4249_v52 = vadd.f32 %v384_v42, %v4222_v1  ;;  %v4280_v35 = vadd.f32 %v392_v20, %v4222_v1 }
 0x223   :  { %v374_v53 = vmul.f32 0.2, %v324_v48  ;;  %v381_v54 = vmul.f32 0.2, %v367_v51  ;;  %v422_v3 = vsel %vm28_vm0, %v4259_v34, -inf }
 0x224   :  { %v4251_v55 = vpop.permute.xlu0 %734  ;;  %v416_v57 = vsel %vm28_vm0, %v4249_v52, -inf  ;;  %v440_v40 = vsel %vm28_vm0, %v4280_v35, -inf }
 0x225   :  { %v388_v58 = vmax.f32 %v324_v48, %v374_v53  ;;  %v395_v59 = vmax.f32 %v367_v51, %v381_v54  ;;  %v328_v61 = vpop.permute.xlu1 %327  ;;  %3623 = vmatprep.subr.mxu0 %v4251_v55  ;;  %444 = vmax.xlane.f32.xlu0 %v443_v56 }
 0x226   :  { %v338_v62 = vadd.f32 %v4198_v46, %v328_v61  ;;  %417 = vmax.xlane.f32.xlu1 %v416_v57 }
 0x227   :  { %v4263_v60 = vadd.f32 %v395_v59, %v4193_v39  ;;  %v4270_v10 = vadd.f32 %v388_v58, %v4222_v1 }
 0x228   :  { %v376_v63 = vmul.f32 0.2, %v338_v62 }
 0x229   :  { %v449_v4 = vsel %vm28_vm0, %v4263_v60, -inf  ;;  %v428_v28 = vsel %vm28_vm0, %v4270_v10, -inf }
 0x22a   :  { %v390_v11 = vmax.f32 %v338_v62, %v376_v63  ;;  %423 = vmax.xlane.f32.xlu1 %v422_v3  ;;  %v356_v15 = vpop.permute.xlu1 %355  ;;  %450 = vmax.xlane.f32.xlu0 %v449_v4 }
 0x22b   :  { %v366_v46 = vadd.f32 %v365_v41, %v356_v15 }
 0x22c   :  { %v4275_v29 = vadd.f32 %v390_v11, %v4222_v1 }
 0x22d   :  { %v380_v25 = vmul.f32 0.2, %v366_v46 }
 0x22e   :  { %429 = vmax.xlane.f32.xlu1 %v428_v28  ;;  %v648_v30 = vpop.permute.xlu1 %647  ;;  %v434_v32 = vsel %vm28_vm0, %v4275_v29, -inf }
 0x22f   :  { %3616 = vmatprep.subr.mxu1 %v648_v30  ;;  %v394_v31 = vmax.f32 %v366_v46, %v380_v25 }
 0x230   :  { %3617 = vmatpush3.msra.mxu1 %v648_v30 }
 0x231   :  { %v4285_v33 = vadd.f32 %v394_v31, %v4222_v1 }
 0x232   :  { %435 = vmax.xlane.f32.xlu1 %v434_v32  ;;  %v646_v36 = vpop.permute.xlu1 %645 }
 0x233   :  { %3618 = vmatprep.subr.mxu1 %v646_v36  ;;  %v446_v41 = vsel %vm28_vm0, %v4285_v33, -inf }
 0x234   :  { %3619 = vmatpush3.msra.mxu1 %v646_v36 }
 0x236   :  { %441 = vmax.xlane.f32.xlu1 %v440_v40  ;;  %v4299_v42 = vpop.permute.xlu1 %732 }
 0x23a   :  { %447 = vmax.xlane.f32.xlu1 %v446_v41  ;;  %v4303_v51 = vpop.permute.xlu1 %908 }
 0x240   :  { %821 = vrot.lane.b32.xlu0 %v4115_v8, %s4054_s1 }
 0x244   :  { %819 = vrot.lane.b32.xlu0 %v4120_v9, %s4054_s1 }
 0x248   :  { %995 = vrot.lane.b32.xlu0 %v4115_v8, %s4055_s30 }
 0x24b   :  { %906 = vrot.lane.b32.xlu1 %v4120_v9, %s4052_s25 }
 0x24f   :  { %1082 = vrot.lane.b32.xlu1 %v4115_v8, %s4056_s4 }
 0x29a   :  { %v415_v43 = vpop.xlane.xlu0 %414 }
 0x29b   :  { %v453_v44 = vsub.f32 %v4201_v47, %v415_v43 }
 0x29d   :  { %v468_v21 = vmul.f32 1.442695, %v453_v44 }
 0x29e   :  { %v421_v24 = vpop.xlane.xlu0 %420 }
 0x29f   :  { %3867 = vpow2.f32 %v468_v21  ;;  %v455_v48 = vsub.f32 %v4204_v49, %v421_v24 }
 0x2a1   :  { %v472_v53 = vmul.f32 1.442695, %v455_v48 }
 0x2a2   :  { %v427_v54 = vpop.xlane.xlu0 %426 }
 0x2a3   :  { %3869 = vpow2.f32 %v472_v53  ;;  %v457_v12 = vsub.f32 %v4220_v0, %v427_v54 }
 0x2a4   :  { %v412_v56 = vpop.xlane.xlu1 %411 }
 0x2a5   :  { %v476_v57 = vmul.f32 1.442695, %v457_v12  ;;  %v452_v8 = vsub.f32 %v4227_v16, %v412_v56 }
 0x2a6   :  { %v433_v58 = vpop.xlane.xlu0 %432 }
 0x2a7   :  { %3871 = vpow2.f32 %v476_v57  ;;  %v466_v59 = vmul.f32 1.442695, %v452_v8  ;;  %v459_v47 = vsub.f32 %v4230_v19, %v433_v58 }
 0x2a9   :  { %3873 = vpow2.f32 %v466_v59  ;;  %v480_v61 = vmul.f32 1.442695, %v459_v47 }
 0x2aa   :  { %v439_v62 = vpop.xlane.xlu0 %438 }
 0x2ab   :  { %3875 = vpow2.f32 %v480_v61  ;;  %v461_v49 = vsub.f32 %v4239_v38, %v439_v62 }
 0x2ac   :  { %v4309_v63 = vpop.eup %3867 }
 0x2ad   :  { %v484_v2 = vmul.f32 1.442695, %v461_v49  ;;  %v497_v0 = vsel %vm28_vm0, %v4309_v63, 0.0 }
 0x2ae   :  { %498 = vadd.xlane.f32.xlu0 %v497_v0  ;;  %v445_v3 = vpop.xlane.xlu0 %444 }
 0x2af   :  { %3877 = vpow2.f32 %v484_v2  ;;  %v463_v16 = vsub.f32 %v4245_v45, %v445_v3  ;;  %v418_v4 = vpop.xlane.xlu1 %417 }
 0x2b0   :  { %v4314_v11 = vpop.eup %3869  ;;  %v454_v19 = vsub.f32 %v4249_v52, %v418_v4 }
 0x2b1   :  { %v488_v15 = vmul.f32 1.442695, %v463_v16  ;;  %v503_v38 = vsel %vm28_vm0, %v4314_v11, 0.0 }
 0x2b2   :  { %v470_v46 = vmul.f32 1.442695, %v454_v19  ;;  %504 = vadd.xlane.f32.xlu0 %v503_v38 }
 0x2b3   :  { %3879 = vpow2.f32 %v488_v15  ;;  %v424_v20 = vpop.xlane.xlu1 %423  ;;  %v451_v25 = vpop.xlane.xlu0 %450 }
 0x2b4   :  { %v4319_v28 = vpop.eup %3871  ;;  %3881 = vpow2.f32 %v470_v46  ;;  %v456_v30 = vsub.f32 %v4259_v34, %v424_v20  ;;  %v465_v45 = vsub.f32 %v4263_v60, %v451_v25 }
 0x2b5   :  { %v509_v31 = vsel %vm28_vm0, %v4319_v28, 0.0 }
 0x2b6   :  { %v4325_v52 = vpop.eup %3873  ;;  %v474_v32 = vmul.f32 1.442695, %v456_v30  ;;  %v492_v36 = vmul.f32 1.442695, %v465_v45  ;;  %510 = vadd.xlane.f32.xlu0 %v509_v31 }
 0x2b7   :  { %v430_v40 = vpop.xlane.xlu1 %429  ;;  %v4327_v41 = vpop.permute.xlu0 %821  ;;  %v494_v43 = vsel %vm28_vm0, %v4325_v52, 0.0 }
 0x2b8   :  { %v4331_v44 = vpop.eup %3875  ;;  %3883 = vpow2.f32 %v474_v32  ;;  %v458_v34 = vsub.f32 %v4270_v10, %v430_v40  ;;  %3630 = vmatprep.subr.mxu1 %v4327_v41  ;;  %495 = vadd.xlane.f32.xlu1 %v494_v43 }
 0x2b9   :  { %3885 = vpow2.f32 %v492_v36  ;;  %v515_v60 = vsel %vm28_vm0, %v4331_v44, 0.0 }
 0x2ba   :  { %v478_v21 = vmul.f32 1.442695, %v458_v34  ;;  %516 = vadd.xlane.f32.xlu0 %v515_v60 }
 0x2bb   :  { %v436_v24 = vpop.xlane.xlu1 %435  ;;  %v820_v20 = vpop.permute.xlu0 %819 }
 0x2bc   :  { %v4337_v48 = vpop.eup %3877  ;;  %3887 = vpow2.f32 %v478_v21  ;;  %v460_v53 = vsub.f32 %v4275_v29, %v436_v24 }
 0x2bd   :  { %v521_v54 = vsel %vm28_vm0, %v4337_v48, 0.0 }
 0x2be   :  { %v482_v12 = vmul.f32 1.442695, %v460_v53  ;;  %522 = vadd.xlane.f32.xlu0 %v521_v54 }
 0x2bf   :  { %v442_v10 = vpop.xlane.xlu1 %441  ;;  %v4380_v25 = vpop.permute.xlu0 %995 }
 0x2c0   :  { %v4342_v56 = vpop.eup %3879  ;;  %3889 = vpow2.f32 %v482_v12  ;;  %v462_v57 = vsub.f32 %v4280_v35, %v442_v10 }
 0x2c1   :  { %v4345_v8 = vpop.eup %3881  ;;  %v527_v58 = vsel %vm28_vm0, %v4342_v56, 0.0 }
 0x2c2   :  { %v486_v59 = vmul.f32 1.442695, %v462_v57  ;;  %528 = vadd.xlane.f32.xlu0 %v527_v58  ;;  %v500_v29 = vsel %vm28_vm0, %v4345_v8, 0.0 }
 0x2c3   :  { %501 = vadd.xlane.f32.xlu1 %v500_v29  ;;  %v448_v47 = vpop.xlane.xlu1 %447 }
 0x2c4   :  { %3891 = vpow2.f32 %v486_v59  ;;  %v464_v61 = vsub.f32 %v4285_v33, %v448_v47 }
 0x2c5   :  { %v4352_v62 = vpop.eup %3883 }
 0x2c6   :  { %v4354_v49 = vpop.eup %3885  ;;  %v490_v35 = vmul.f32 1.442695, %v464_v61  ;;  %v506_v2 = vsel %vm28_vm0, %v4352_v62, 0.0 }
 0x2c7   :  { %507 = vadd.xlane.f32.xlu1 %v506_v2  ;;  %v533_v0 = vsel %vm28_vm0, %v4354_v49, 0.0  ;;  %v907_v30 = vpop.permute.xlu1 %906 }
 0x2c8   :  { %3893 = vpow2.f32 %v490_v35  ;;  %534 = vadd.xlane.f32.xlu0 %v533_v0 }
 0x2c9   :  { %v4360_v3 = vpop.eup %3887 }
 0x2ca   :  { %v512_v16 = vsel %vm28_vm0, %v4360_v3, 0.0 }
 0x2cb   :  { %513 = vadd.xlane.f32.xlu1 %v512_v16  ;;  %v4382_v31 = vpop.permute.xlu1 %1082 }
 0x2cd   :  { %v4364_v33 = vpop.eup %3889 }
 0x2ce   :  { %v518_v4 = vsel %vm28_vm0, %v4364_v33, 0.0 }
 0x2cf   :  { %519 = vadd.xlane.f32.xlu1 %v518_v4 }
 0x2d1   :  { %v4368_v19 = vpop.eup %3891 }
 0x2d2   :  { %v524_v15 = vsel %vm28_vm0, %v4368_v19, 0.0 }
 0x2d3   :  { %525 = vadd.xlane.f32.xlu1 %v524_v15 }
 0x2d5   :  { %v4372_v38 = vpop.eup %3893 }
 0x2d6   :  { %v530_v46 = vsel %vm28_vm0, %v4372_v38, 0.0 }
 0x2d7   :  { %531 = vadd.xlane.f32.xlu1 %v530_v46 }
 0x2de   :  { %993 = vrot.lane.b32.xlu0 %v4120_v9, %s4055_s30 }
 0x2e8   :  { %1080 = vrot.lane.b32.xlu1 %v4120_v9, %s4056_s4 }
 0x337   :  { %v499_v45 = vpop.xlane.xlu0 %498 }
 0x338   :  { %3895 = vrcp.f32 %v499_v45 }
 0x33b   :  { %v505_v32 = vpop.xlane.xlu0 %504 }
 0x33f   :  { %v511_v40 = vpop.xlane.xlu0 %510 }
 0x341   :  { %v496_v36 = vpop.xlane.xlu1 %495 }
 0x342   :  { %3897 = vrcp.f32 %v496_v36 }
 0x343   :  { %v517_v43 = vpop.xlane.xlu0 %516  ;;  %3899 = vrcp.f32 %v505_v32  ;;  %v1245_v32 = vld [vmem:[%s4987_s2 + $0x50] sm:$0xff] }
 0x345   :  { %v3896_v60 = vpop.eup %3895 }
 0x346   :  { %v551_v54 = vmul.f32 %v3896_v60, %v4309_v63 }
 0x347   :  { %v523_v53 = vpop.xlane.xlu0 %522 }
 0x34b   :  { %v529_v10 = vpop.xlane.xlu0 %528 }
 0x34c   :  { %v502_v34 = vpop.xlane.xlu1 %501 }
 0x34d   :  { %3901 = vrcp.f32 %v502_v34  ;;  %v1243_v34 = vld [vmem:[%s4987_s2 + $0x40] sm:$0xff] }
 0x34e   :  { %3903 = vrcp.f32 %v511_v40  ;;  %v1244_v40 = vld [vmem:[%s4987_s2 + $0x48] sm:$0xff] }
 0x34f   :  { %v3898_v21 = vpop.eup %3897 }
 0x350   :  { %v508_v9 = vpop.xlane.xlu1 %507  ;;  %v550_v24 = vmul.f32 %v3898_v21, %v4325_v52  ;;  %v3900_v57 = vpop.eup %3899  ;;  %v1242_v21 = vld [vmem:[%s4987_s2 + $0x38] sm:$0xff] }
 0x351   :  { %3905 = vrcp.f32 %v508_v9  ;;  %v535_v47 = vpop.xlane.xlu0 %534 }
 0x352   :  { %3613 = vmatprep.mubr.msk.f32.mxu0 %vm28_vm0, %v550_v24  ;;  %3907 = vrcp.f32 %v517_v43  ;;  %v1241_v24 = vld [vmem:[%s4987_s2 + $0x30] sm:$0xff] }
 0x353   :  { %3614 = vmatmul.mubr.msk.f32.vlgmr.msra.gmra.mxu0 %vm28_vm0, %v551_v54 }
 0x354   :  { %3624 = vmatpush3.msra.mxu0 %v4251_v55  ;;  %v514_v12 = vpop.xlane.xlu1 %513  ;;  %v553_v55 = vmul.f32 %v3900_v57, %v4314_v11 }
 0x355   :  { %3909 = vrcp.f32 %v514_v12  ;;  %3625 = vmatprep.subr.mxu0 %v4299_v42  ;;  %v994_v16 = vpop.permute.xlu0 %993 }
 0x356   :  { %3626 = vmatpush3.msra.mxu0 %v4299_v42  ;;  %3911 = vrcp.f32 %v523_v53  ;;  %v1240_v53 = vld [vmem:[%s4987_s2 + $0x28] sm:$0xff] }
 0x357   :  { %3637 = vmatprep.subr.mxu0 %v4303_v51 }
 0x358   :  { %v520_v52 = vpop.xlane.xlu1 %519 }
 0x359   :  { %3913 = vrcp.f32 %v520_v52 }
 0x35a   :  { %v3902_v63 = vpop.eup %3901  ;;  %3915 = vrcp.f32 %v529_v10 }
 0x35b   :  { %v552_v58 = vmul.f32 %v3902_v63, %v4345_v8  ;;  %v3904_v29 = vpop.eup %3903 }
 0x35c   :  { %v526_v59 = vpop.xlane.xlu1 %525  ;;  %v555_v8 = vmul.f32 %v3904_v29, %v4319_v28 }
 0x35d   :  { %3917 = vrcp.f32 %v526_v59  ;;  %3620 = vmatprep.mubr.msk.f32.mxu1 %vm28_vm0, %v552_v58 }
 0x35e   :  { %v3906_v42 = vpop.eup %3905  ;;  %3621 = vmatmul.mubr.msk.f32.vlgmr.msra.gmra.mxu1 %vm28_vm0, %v553_v55  ;;  %3919 = vrcp.f32 %v535_v47 }
 0x35f   :  { %3631 = vmatpush3.msra.mxu1 %v4327_v41  ;;  %v554_v61 = vmul.f32 %v3906_v42, %v4352_v62  ;;  %v3908_v2 = vpop.eup %3907 }
 0x360   :  { %3632 = vmatprep.subr.mxu1 %v820_v20  ;;  %v532_v35 = vpop.xlane.xlu1 %531  ;;  %v557_v62 = vmul.f32 %v3908_v2, %v4331_v44 }
 0x361   :  { %3633 = vmatpush3.msra.mxu1 %v820_v20  ;;  %3921 = vrcp.f32 %v532_v35  ;;  %3627 = vmatprep.mubr.msk.f32.mxu0 %vm28_vm0, %v554_v61 }
 0x362   :  { %v3910_v11 = vpop.eup %3909  ;;  %3644 = vmatprep.subr.mxu1 %v4380_v25  ;;  %3628 = vmatmul.mubr.msk.f32.vlgmr.msra.gmra.mxu0 %vm28_vm0, %v555_v8 }
 0x363   :  { %3638 = vmatpush3.msra.mxu0 %v4303_v51  ;;  %v556_v41 = vmul.f32 %v3910_v11, %v4360_v3  ;;  %v3912_v0 = vpop.eup %3911 }
 0x364   :  { %3639 = vmatprep.subr.mxu0 %v907_v30  ;;  %v559_v51 = vmul.f32 %v3912_v0, %v4337_v48  ;;  %v1081_v15 = vpop.permute.xlu1 %1080 }
 0x365   :  { %3640 = vmatpush3.msra.mxu0 %v907_v30  ;;  %3634 = vmatprep.mubr.msk.f32.mxu1 %vm28_vm0, %v556_v41 }
 0x366   :  { %v3914_v28 = vpop.eup %3913  ;;  %3651 = vmatprep.subr.mxu0 %v4382_v31  ;;  %3635 = vmatmul.mubr.msk.f32.vlgmr.msra.gmra.mxu1 %vm28_vm0, %v557_v62 }
 0x367   :  { %3645 = vmatpush3.msra.mxu1 %v4380_v25  ;;  %v558_v4 = vmul.f32 %v3914_v28, %v4364_v33  ;;  %v3916_v3 = vpop.eup %3915 }
 0x368   :  { %3646 = vmatprep.subr.mxu1 %v994_v16  ;;  %v561_v20 = vmul.f32 %v3916_v3, %v4342_v56 }
 0x369   :  { %3647 = vmatpush3.msra.mxu1 %v994_v16  ;;  %3641 = vmatprep.mubr.msk.f32.mxu0 %vm28_vm0, %v558_v4 }
 0x36a   :  { %v3918_v44 = vpop.eup %3917  ;;  %3642 = vmatmul.mubr.msk.f32.vlgmr.msra.gmra.mxu0 %vm28_vm0, %v559_v51  ;;  %v3432_v51 = vld [vmem:[%s4987_s2 + $0x20] ss:$0 sm:$0xff] }
 0x36b   :  { %3652 = vmatpush3.msra.mxu0 %v4382_v31  ;;  %v560_v46 = vmul.f32 %v3918_v44, %v4368_v19  ;;  %v3920_v25 = vpop.eup %3919 }
 0x36c   :  { %3653 = vmatprep.subr.mxu0 %v1081_v15  ;;  %v563_v30 = vmul.f32 %v3920_v25, %v4354_v49  ;;  %v1246_v49 = vld [vmem:[%s4987_s2 + $0x58] sm:$0xff] }
 0x36d   :  { %3654 = vmatpush3.msra.mxu0 %v1081_v15  ;;  %3648 = vmatprep.mubr.msk.f32.mxu1 %vm28_vm0, %v560_v46 }
 0x36e   :  { %v3922_v48 = vpop.eup %3921  ;;  %3649 = vmatmul.mubr.msk.f32.vlgmr.msra.gmra.mxu1 %vm28_vm0, %v561_v20  ;;  %3675 = vmatprep.subr.mxu0 %v4041_v5 }
 0x36f   :  { %v562_v33 = vmul.f32 %v3922_v48, %v4372_v38  ;;  %3658 = vmatprep.subr.mxu1 %v1246_v49 }
 0x370   :  { %3659 = vmatpush3.msra.mxu1 %v1246_v49  ;;  %v1247_v49 = vld [vmem:[%s4987_s2 + $0x60] sm:$0x3f] }
 0x371   :  { %3655 = vmatprep.mubr.msk.f32.mxu0 %vm28_vm0, %v562_v33  ;;  %3660 = vmatprep.subr.mxu1 %v1245_v32 }
 0x372   :  { %3656 = vmatmul.mubr.msk.f32.vlgmr.msra.gmra.mxu0 %vm28_vm0, %v563_v30  ;;  %3661 = vmatpush3.msra.mxu1 %v1245_v32 }
 0x373   :  { %3679 = vmatprep.mubr.msk.f32.mxu0 %vm4042_vm2, %v4041_v5  ;;  %3662 = vmatprep.subr.mxu1 %v1244_v40 }
 0x374   :  { %3663 = vmatpush3.msra.mxu1 %v1244_v40 }
 0x375   :  { %3664 = vmatprep.subr.mxu1 %v1243_v34 }
 0x376   :  { %3665 = vmatpush3.msra.mxu1 %v1243_v34 }
 0x377   :  { %3666 = vmatprep.subr.mxu1 %v1242_v21 }
 0x378   :  { %3667 = vmatpush3.msra.mxu1 %v1242_v21 }
 0x379   :  { %3668 = vmatprep.subr.mxu1 %v1241_v24 }
 0x37a   :  { %3669 = vmatpush3.msra.mxu1 %v1241_v24 }
 0x37b   :  { %3670 = vmatprep.subr.mxu1 %v1240_v53 }
 0x37c   :  { %3671 = vmatpush3.msra.mxu1 %v1240_v53 }
 0x413   :  { %v4425_v56 = vpop.f32.mrf.mxu0 }
 0x415   :  { %v4428_v45 = vpop.f32.mrf.mxu0 }
 0x41e   :  { %v3622_v19 = vpop.f32.mrf.mxu1 }
 0x41f   :  { %1171 = vrot.lane.b32.xlu1 %v3622_v19, %s4057_s5 }
 0x420   :  { %v723_v31 = vpop.f32.mrf.mxu1 }
 0x421   :  { %1169 = vrot.lane.b32.xlu0 %v723_v31, %s4057_s5  ;;  %v1248_v31 = vld [vmem:[%s4987_s2 + $0x68] sm:$0x3f] }
 0x422   :  { %v3629_v38 = vpop.f32.mrf.mxu0 }
 0x423   :  { %1179 = vrot.lane.b32.xlu1 %v3629_v38, %s4058_s10 }
 0x424   :  { %v810_v36 = vpop.f32.mrf.mxu0 }
 0x425   :  { %1177 = vrot.lane.b32.xlu0 %v810_v36, %s4058_s10 }
 0x426   :  { %v3636_v43 = vpop.f32.mrf.mxu1 }
 0x427   :  { %1187 = vrot.lane.b32.xlu1 %v3636_v43, %s4059_s15 }
 0x428   :  { %v897_v60 = vpop.f32.mrf.mxu1 }
 0x429   :  { %1185 = vrot.lane.b32.xlu0 %v897_v60, %s4059_s15 }
 0x42a   :  { %v3643_v9 = vpop.f32.mrf.mxu0 }
 0x42b   :  { %1195 = vrot.lane.b32.xlu1 %v3643_v9, %s4060_s20 }
 0x42c   :  { %v984_v54 = vpop.f32.mrf.mxu0 }
 0x42d   :  { %1193 = vrot.lane.b32.xlu0 %v984_v54, %s4060_s20 }
 0x42e   :  { %v3650_v12 = vpop.f32.mrf.mxu1 }
 0x42f   :  { %1203 = vrot.lane.b32.xlu1 %v3650_v12, %s4061_s22 }
 0x430   :  { %v1071_v10 = vpop.f32.mrf.mxu1 }
 0x431   :  { %1201 = vrot.lane.b32.xlu0 %v1071_v10, %s4061_s22 }
 0x432   :  { %v3657_v52 = vpop.f32.mrf.mxu0 }
 0x433   :  { %1211 = vrot.lane.b32.xlu1 %v3657_v52, %s4062_s26 }
 0x434   :  { %v1158_v57 = vpop.f32.mrf.mxu0 }
 0x435   :  { %1209 = vrot.lane.b32.xlu0 %v1158_v57, %s4062_s26  ;;  %s4063_s26 = smov 124  }
 0x491   :  { %v1172_v63 = vpop.permute.xlu1 %1171 }
 0x492   :  { %v1217_v35 = vsel %vm1215_vm5, %v4425_v56, %v1172_v63 }
 0x493   :  { %v1170_v58 = vpop.permute.xlu0 %1169 }
 0x494   :  { %v1216_v11 = vsel %vm1215_vm5, %v4428_v45, %v1170_v58 }
 0x495   :  { %v1180_v59 = vpop.permute.xlu1 %1179 }
 0x496   :  { %v1219_v2 = vsel %vm28_vm0, %v1217_v35, %v1180_v59 }
 0x497   :  { %v1178_v55 = vpop.permute.xlu0 %1177 }
 0x498   :  { %v1218_v0 = vsel %vm28_vm0, %v1216_v11, %v1178_v55 }
 0x499   :  { %v1188_v29 = vpop.permute.xlu1 %1187 }
 0x49a   :  { %v1222_v41 = vsel %vm1220_vm6, %v1219_v2, %v1188_v29 }
 0x49b   :  { %v1186_v47 = vpop.permute.xlu0 %1185 }
 0x49c   :  { %v1221_v16 = vsel %vm1220_vm6, %v1218_v0, %v1186_v47 }
 0x49d   :  { %v1196_v42 = vpop.permute.xlu1 %1195 }
 0x49e   :  { %v1225_v28 = vsel %vm1223_vm7, %v1222_v41, %v1196_v42 }
 0x49f   :  { %v1194_v61 = vpop.permute.xlu0 %1193 }
 0x4a0   :  { %v1224_v44 = vsel %vm1223_vm7, %v1221_v16, %v1194_v61 }
 0x4a1   :  { %v1204_v8 = vpop.permute.xlu1 %1203 }
 0x4a2   :  { %v1228_v4 = vsel %vm1226_vm8, %v1225_v28, %v1204_v8 }
 0x4a3   :  { %v1202_v62 = vpop.permute.xlu0 %1201 }
 0x4a4   :  { %v1227_v46 = vsel %vm1226_vm8, %v1224_v44, %v1202_v62 }
 0x4a5   :  { %v1212_v3 = vpop.permute.xlu1 %1211 }
 0x4a6   :  { %v1231_v15 = vsel %vm1229_vm9, %v1228_v4, %v1212_v3 }
 0x4a7   :  { %v1210_v20 = vpop.permute.xlu0 %1209  ;;  %v1237_v25 = vadd.f32 %v3432_v51, %v1231_v15 }
 0x4a8   :  { %v1230_v48 = vsel %vm1229_vm9, %v1227_v46, %v1210_v20 }
 0x4a9   :  { %v1236_v33 = vadd.f32 %v3432_v51, %v1230_v48  ;;  %v1239_v56 = vmax.f32 %v1237_v25, 0.0 }
 0x4ab   :  { %v1238_v30 = vmax.f32 %v1236_v33, 0.0 }
 0x4ad   :  { %3672 = vmatprep.mubr.msk.f32.mxu1 %vm110_vm1, %v1238_v30 }
 0x4ae   :  { %3673 = vmatmul.mubr.msk.f32.vlgmr.msra.gmra.mxu1 %vm110_vm1, %v1239_v56 }
 0x56e   :  { %v4479_v19 = vpop.f32.mrf.mxu1 }
 0x56f   :  { %3676 = vmatpush3.xpose.msk.msra.mxu0 %vm1229_vm9, %v4479_v19  ;;  %3687 = vmatprep.subr.mxu1 %v4479_v19 }
 0x570   :  { %v4484_v45 = vpop.f32.mrf.mxu1  ;;  %3688 = vmatpush3.msra.mxu1 %v4479_v19  ;;  %3677 = vmatprep.subr.mxu0 %v4041_v5 }
 0x571   :  { %3689 = vmatprep.subr.mxu1 %v4484_v45 }
 0x572   :  { %3690 = vmatpush3.msra.mxu1 %v4484_v45 }
 0x573   :  { %3678 = vmatpush3.xpose.msk.msra.mxu0 %vm1229_vm9, %v4484_v45 }
 0x574   :  { %3682 = vmatprep.subr.msk.mxu0 %vm1229_vm9, %v1248_v31 }
 0x576   :  { %3680 = vmatmul.mubr.msk.f32.vlgmr.msra.gmra.mxu0 %vm1229_vm9, %v1247_v49 }
 0x577   :  { %3683 = vmatpush3.xpose.msk.msra.mxu0 %vm1229_vm9, %v1248_v31  ;;  %3684 = vmatprep.mubr.msk.f32.mxu0 %vm1229_vm9, %v4484_v45 }
 0x57a   :  { %3685 = vmatmul.mubr.msk.f32.vlgmr.msra.gmra.mxu0 %vm1229_vm9, %v4479_v19 }
 0x636   :  { %v4505_v38 = vpop.f32.mrf.mxu0 }
 0x637   :  { %v1515_v43 = vrot.slane %v4505_v38, %v4163_v22  ;;  %v1501_v34 = vrot.slane %v4505_v38, %v4166_v23  ;;  %v1529_v12 = vrot.slane %v4505_v38, %v4175_v26  ;;  %v1543_v11 = vrot.slane %v4505_v38, %v4178_v27 }
 0x638   :  { %v3681_v32 = vpop.f32.mrf.mxu0  ;;  %v1557_v4 = vrot.slane %v4505_v38, %v4191_v37 }
 0x63a   :  { %v3686_v36 = vpop.f32.mrf.mxu0 }
 0x63b   :  { %1509 = vperm.xlu0 %3843, %v3686_v36   ;;  %1495 = vperm.xlu1 %3842, %v3686_v36  }
 0x63c   :  { %v1479_v40 = vpop.f32.mrf.mxu0 }
 0x63f   :  { %3846 = vset.pattern.permute.xlu0 %v4044_v7  ;;  %3844 = vset.pattern.permute.xlu1 %v4045_v13 }
 0x640   :  { %1523 = vperm.xlu1 %3844, %v3686_v36   ;;  %1490 = vperm.xlu0 %3846, %v1479_v40  }
 0x644   :  { %3845 = vset.pattern.permute.xlu1 %v4046_v14  ;;  %3849 = vset.pattern.permute.xlu0 %v4046_v14 }
 0x645   :  { %1537 = vperm.xlu1 %3845, %v3686_v36   ;;  %1533 = vperm.xlu0 %3849, %v1479_v40  }
 0x649   :  { %3847 = vset.pattern.permute.xlu1 %v4043_v6  ;;  %3850 = vset.pattern.permute.xlu0 %v4047_v17 }
 0x64a   :  { %1505 = vperm.xlu1 %3847, %v1479_v40   ;;  %1551 = vperm.xlu0 %3850, %v3686_v36  }
 0x64e   :  { %3848 = vset.pattern.permute.xlu1 %v4045_v13  ;;  %3855 = vset.pattern.permute.xlu0 %v4043_v6 }
 0x64f   :  { %1519 = vperm.xlu1 %3848, %v1479_v40  }
 0x653   :  { %3851 = vset.pattern.permute.xlu1 %v4048_v18 }
 0x654   :  { %1565 = vperm.xlu1 %3851, %v3686_v36   ;;  %v1571_v36 = vrot.slane %v4505_v38, %v4207_v50 }
 0x658   :  { %3852 = vset.pattern.permute.xlu1 %v4047_v17 }
 0x659   :  { %1547 = vperm.xlu1 %3852, %v1479_v40  }
 0x65d   :  { %3853 = vset.pattern.permute.xlu1 %v4048_v18 }
 0x65e   :  { %1561 = vperm.xlu1 %3853, %v1479_v40  }
 0x662   :  { %3854 = vset.pattern.permute.xlu1 %v4044_v7 }
 0x6b6   :  { %v1510_v60 = vpop.permute.xlu0 %1509  ;;  %v1496_v21 = vpop.permute.xlu1 %1495 }
 0x6b7   :  { %v1517_v9 = vadd.f32 %v1515_v43, %v1510_v60  ;;  %v1503_v24 = vadd.f32 %v1501_v34, %v1496_v21 }
 0x6b9   :  { %v1577_v53 = vmul.f32 0.2, %v1517_v9  ;;  %v1575_v54 = vmul.f32 0.2, %v1503_v24 }
 0x6bb   :  { %v1589_v10 = vmax.f32 %v1517_v9, %v1577_v53  ;;  %v1587_v52 = vmax.f32 %v1503_v24, %v1575_v54  ;;  %v1524_v57 = vpop.permute.xlu1 %1523  ;;  %v1491_v63 = vpop.permute.xlu0 %1490 }
 0x6bc   :  { %v1531_v58 = vadd.f32 %v1529_v12, %v1524_v57  ;;  %v1502_v59 = vadd.f32 %v1501_v34, %v1491_v63 }
 0x6bd   :  { %v4526_v55 = vadd.f32 %v1587_v52, %v4193_v39  ;;  %v4529_v29 = vadd.f32 %v1589_v10, %v4193_v39 }
 0x6be   :  { %v1579_v47 = vmul.f32 0.2, %v1531_v58  ;;  %v1574_v42 = vmul.f32 0.2, %v1502_v59 }
 0x6bf   :  { %v1613_v61 = vsel %vm28_vm0, %v4526_v55, -inf  ;;  %v1619_v35 = vsel %vm28_vm0, %v4529_v29, -inf }
 0x6c0   :  { %v1591_v8 = vmax.f32 %v1531_v58, %v1579_v47  ;;  %v1586_v2 = vmax.f32 %v1502_v59, %v1574_v42  ;;  %v1538_v41 = vpop.permute.xlu1 %1537  ;;  %1614 = vmax.xlane.f32.xlu1 %v1613_v61  ;;  %1620 = vmax.xlane.f32.xlu0 %v1619_v35  ;;  %v1534_v62 = vpop.permute.xlu0 %1533 }
 0x6c1   :  { %v1545_v0 = vadd.f32 %v1543_v11, %v1538_v41  ;;  %v1544_v63 = vadd.f32 %v1543_v11, %v1534_v62 }
 0x6c2   :  { %v4538_v28 = vadd.f32 %v1591_v8, %v4193_v39  ;;  %v4545_v51 = vadd.f32 %v1586_v2, %v4222_v1 }
 0x6c3   :  { %v1581_v15 = vmul.f32 0.2, %v1545_v0  ;;  %v1580_v59 = vmul.f32 0.2, %v1544_v63 }
 0x6c4   :  { %v1625_v16 = vsel %vm28_vm0, %v4538_v28, -inf  ;;  %v1610_v48 = vsel %vm28_vm0, %v4545_v51, -inf }
 0x6c5   :  { %v1506_v3 = vpop.permute.xlu1 %1505  ;;  %1626 = vmax.xlane.f32.xlu0 %v1625_v16  ;;  %v1552_v44 = vpop.permute.xlu0 %1551  ;;  %v1593_v33 = vmax.f32 %v1545_v0, %v1581_v15  ;;  %v1592_v35 = vmax.f32 %v1544_v63, %v1580_v59 }
 0x6c6   :  { %v1516_v46 = vadd.f32 %v1515_v43, %v1506_v3  ;;  %v1559_v20 = vadd.f32 %v1557_v4, %v1552_v44 }
 0x6c7   :  { %v4557_v43 = vadd.f32 %v1593_v33, %v4193_v39  ;;  %v4585_v62 = vadd.f32 %v1592_v35, %v4222_v1 }
 0x6c8   :  { %v1576_v25 = vmul.f32 0.2, %v1516_v46  ;;  %v1583_v56 = vmul.f32 0.2, %v1559_v20 }
 0x6c9   :  { %1611 = vmax.xlane.f32.xlu0 %v1610_v48  ;;  %v1631_v9 = vsel %vm28_vm0, %v4557_v43, -inf }
 0x6ca   :  { %v1588_v30 = vmax.f32 %v1516_v46, %v1576_v25  ;;  %v1520_v31 = vpop.permute.xlu1 %1519  ;;  %v1595_v32 = vmax.f32 %v1559_v20, %v1583_v56 }
 0x6cb   :  { %v1530_v52 = vadd.f32 %v1529_v12, %v1520_v31 }
 0x6cc   :  { %v4550_v49 = vadd.f32 %v1588_v30, %v4222_v1  ;;  %v4564_v24 = vadd.f32 %v1595_v32, %v4193_v39 }
 0x6cd   :  { %v1578_v58 = vmul.f32 0.2, %v1530_v52 }
 0x6ce   :  { %v1616_v40 = vsel %vm28_vm0, %v4550_v49, -inf  ;;  %v1637_v53 = vsel %vm28_vm0, %v4564_v24, -inf }
 0x6cf   :  { %v1566_v34 = vpop.permute.xlu1 %1565  ;;  %1617 = vmax.xlane.f32.xlu0 %v1616_v40  ;;  %v1590_v47 = vmax.f32 %v1530_v52, %v1578_v58 }
 0x6d0   :  { %v1573_v60 = vadd.f32 %v1571_v36, %v1566_v34 }
 0x6d1   :  { %1825 = vrot.lane.b32.xlu1 %v4479_v19, %s4051_s24  ;;  %v4578_v41 = vadd.f32 %v1590_v47, %v4222_v1 }
 0x6d2   :  { %v1585_v21 = vmul.f32 0.2, %v1573_v60 }
 0x6d3   :  { %1632 = vmax.xlane.f32.xlu0 %v1631_v9  ;;  %v1622_v11 = vsel %vm28_vm0, %v4578_v41, -inf }
 0x6d4   :  { %v1597_v38 = vmax.f32 %v1573_v60, %v1585_v21  ;;  %v1548_v57 = vpop.permute.xlu1 %1547 }
 0x6d5   :  { %1912 = vrot.lane.b32.xlu1 %v4479_v19, %s4050_s23  ;;  %v1558_v42 = vadd.f32 %v1557_v4, %v1548_v57  ;;  %v1628_v4 = vsel %vm28_vm0, %v4585_v62, -inf }
 0x6d6   :  { %v4571_v54 = vadd.f32 %v1597_v38, %v4193_v39 }
 0x6d7   :  { %1638 = vmax.xlane.f32.xlu0 %v1637_v53  ;;  %v1582_v8 = vmul.f32 0.2, %v1558_v42 }
 0x6d8   :  { %v1643_v10 = vsel %vm28_vm0, %v4571_v54, -inf }
 0x6d9   :  { %v1562_v61 = vpop.permute.xlu1 %1561  ;;  %v1594_v12 = vmax.f32 %v1558_v42, %v1582_v8 }
 0x6da   :  { %v1572_v2 = vadd.f32 %v1571_v36, %v1562_v61 }
 0x6db   :  { %1644 = vmax.xlane.f32.xlu0 %v1643_v10  ;;  %v4592_v3 = vadd.f32 %v1594_v12, %v4222_v1 }
 0x6dc   :  { %v1584_v0 = vmul.f32 0.2, %v1572_v2 }
 0x6dd   :  { %v1634_v44 = vsel %vm28_vm0, %v4592_v3, -inf }
 0x6de   :  { %v1596_v16 = vmax.f32 %v1572_v2, %v1584_v0 }
 0x6e0   :  { %v4597_v15 = vadd.f32 %v1596_v16, %v4222_v1 }
 0x6e2   :  { %v1640_v46 = vsel %vm28_vm0, %v4597_v15, -inf }
 0x6f1   :  { %1823 = vrot.lane.b32.xlu0 %v4484_v45, %s4051_s24 }
 0x6f5   :  { %1910 = vrot.lane.b32.xlu0 %v4484_v45, %s4050_s23 }
 0x6f9   :  { %1623 = vmax.xlane.f32.xlu1 %v1622_v11  ;;  %2086 = vrot.lane.b32.xlu0 %v4479_v19, %s4052_s25 }
 0x6fd   :  { %1629 = vmax.xlane.f32.xlu1 %v1628_v4 }
 0x701   :  { %1635 = vmax.xlane.f32.xlu1 %v1634_v44 }
 0x705   :  { %1641 = vmax.xlane.f32.xlu1 %v1640_v46 }
 0x716   :  { %1999 = vrot.lane.b32.xlu1 %v4479_v19, %s4054_s1 }
 0x71a   :  { %1997 = vrot.lane.b32.xlu1 %v4484_v45, %s4054_s1 }
 0x71e   :  { %2173 = vrot.lane.b32.xlu1 %v4479_v19, %s4055_s30 }
 0x749   :  { %v1615_v20 = vpop.xlane.xlu1 %1614  ;;  %v1621_v25 = vpop.xlane.xlu0 %1620 }
 0x74a   :  { %v1647_v48 = vsub.f32 %v4526_v55, %v1615_v20  ;;  %v1649_v33 = vsub.f32 %v4529_v29, %v1621_v25 }
 0x74c   :  { %v1660_v30 = vmul.f32 1.442695, %v1647_v48  ;;  %v1664_v56 = vmul.f32 1.442695, %v1649_v33 }
 0x74d   :  { %v1826_v31 = vpop.permute.xlu1 %1825 }
 0x74e   :  { %3923 = vpow2.f32 %v1660_v30  ;;  %3694 = vmatprep.subr.mxu0 %v1826_v31  ;;  %v1627_v32 = vpop.xlane.xlu0 %1626 }
 0x74f   :  { %v1651_v36 = vsub.f32 %v4538_v28, %v1627_v32  ;;  %3695 = vmatpush3.msra.mxu0 %v1826_v31  ;;  %3925 = vpow2.f32 %v1664_v56 }
 0x751   :  { %v1668_v40 = vmul.f32 1.442695, %v1651_v36  ;;  %v4610_v34 = vpop.permute.xlu1 %1912 }
 0x752   :  { %3701 = vmatprep.subr.mxu1 %v4610_v34  ;;  %v1612_v19 = vpop.xlane.xlu0 %1611 }
 0x753   :  { %v1646_v55 = vsub.f32 %v4545_v51, %v1612_v19  ;;  %3927 = vpow2.f32 %v1668_v40 }
 0x755   :  { %v1658_v29 = vmul.f32 1.442695, %v1646_v55 }
 0x757   :  { %3929 = vpow2.f32 %v1658_v29 }
 0x758   :  { %v1618_v60 = vpop.xlane.xlu0 %1617 }
 0x759   :  { %v1648_v21 = vsub.f32 %v4550_v49, %v1618_v60 }
 0x75b   :  { %v4615_v9 = vpop.eup %3923  ;;  %v1662_v38 = vmul.f32 1.442695, %v1648_v21 }
 0x75c   :  { %v1633_v28 = vpop.xlane.xlu0 %1632  ;;  %v1685_v53 = vsel %vm28_vm0, %v4615_v9, 0.0  ;;  %v4619_v10 = vpop.eup %3925 }
 0x75d   :  { %3931 = vpow2.f32 %v1662_v38  ;;  %v1653_v52 = vsub.f32 %v4557_v43, %v1633_v28  ;;  %1686 = vadd.xlane.f32.xlu0 %v1685_v53  ;;  %v1691_v63 = vsel %vm28_vm0, %v4619_v10, 0.0 }
 0x75f   :  { %v1672_v51 = vmul.f32 1.442695, %v1653_v52 }
 0x760   :  { %v1639_v57 = vpop.xlane.xlu0 %1638  ;;  %v4624_v58 = vpop.eup %3927 }
 0x761   :  { %3933 = vpow2.f32 %v1672_v51  ;;  %v1655_v49 = vsub.f32 %v4564_v24, %v1639_v57  ;;  %1692 = vadd.xlane.f32.xlu0 %v1691_v63  ;;  %v1697_v61 = vsel %vm28_vm0, %v4624_v58, 0.0 }
 0x763   :  { %v1676_v59 = vmul.f32 1.442695, %v1655_v49 }
 0x764   :  { %v4627_v47 = vpop.eup %3929  ;;  %v1645_v42 = vpop.xlane.xlu0 %1644 }
 0x765   :  { %3935 = vpow2.f32 %v1676_v59  ;;  %v1657_v43 = vsub.f32 %v4571_v54, %v1645_v42  ;;  %1698 = vadd.xlane.f32.xlu0 %v1697_v61  ;;  %v1682_v35 = vsel %vm28_vm0, %v4627_v47, 0.0 }
 0x766   :  { %1683 = vadd.xlane.f32.xlu1 %v1682_v35 }
 0x767   :  { %v1680_v8 = vmul.f32 1.442695, %v1657_v43 }
 0x768   :  { %v1824_v2 = vpop.permute.xlu0 %1823 }
 0x769   :  { %3937 = vpow2.f32 %v1680_v8  ;;  %3696 = vmatprep.subr.mxu0 %v1824_v2 }
 0x76a   :  { %v4634_v24 = vpop.eup %3931  ;;  %3697 = vmatpush3.msra.mxu0 %v1824_v2 }
 0x76b   :  { %v1688_v12 = vsel %vm28_vm0, %v4634_v24, 0.0 }
 0x76c   :  { %1689 = vadd.xlane.f32.xlu1 %v1688_v12  ;;  %v1911_v28 = vpop.permute.xlu0 %1910 }
 0x76e   :  { %v4638_v0 = vpop.eup %3933 }
 0x76f   :  { %v1703_v54 = vsel %vm28_vm0, %v4638_v0, 0.0 }
 0x770   :  { %1704 = vadd.xlane.f32.xlu0 %v1703_v54  ;;  %v2087_v52 = vpop.permute.xlu0 %2086 }
 0x772   :  { %v4642_v11 = vpop.eup %3935 }
 0x773   :  { %v1709_v16 = vsel %vm28_vm0, %v4642_v11, 0.0 }
 0x774   :  { %1710 = vadd.xlane.f32.xlu0 %v1709_v16 }
 0x776   :  { %v4646_v4 = vpop.eup %3937 }
 0x777   :  { %v1715_v44 = vsel %vm28_vm0, %v4646_v4, 0.0 }
 0x778   :  { %1716 = vadd.xlane.f32.xlu0 %v1715_v44 }
 0x782   :  { %v1624_v46 = vpop.xlane.xlu1 %1623 }
 0x783   :  { %v1650_v20 = vsub.f32 %v4578_v41, %v1624_v46 }
 0x785   :  { %v1666_v25 = vmul.f32 1.442695, %v1650_v20 }
 0x786   :  { %v1630_v48 = vpop.xlane.xlu1 %1629 }
 0x787   :  { %3939 = vpow2.f32 %v1666_v25  ;;  %v1652_v33 = vsub.f32 %v4585_v62, %v1630_v48 }
 0x789   :  { %v1670_v30 = vmul.f32 1.442695, %v1652_v33 }
 0x78a   :  { %v1636_v56 = vpop.xlane.xlu1 %1635 }
 0x78b   :  { %3941 = vpow2.f32 %v1670_v30  ;;  %v1654_v31 = vsub.f32 %v4592_v3, %v1636_v56 }
 0x78d   :  { %v1674_v32 = vmul.f32 1.442695, %v1654_v31 }
 0x78e   :  { %v1642_v36 = vpop.xlane.xlu1 %1641  ;;  %2084 = vrot.lane.b32.xlu0 %v4484_v45, %s4052_s25 }
 0x78f   :  { %3943 = vpow2.f32 %v1674_v32  ;;  %v1656_v40 = vsub.f32 %v4597_v15, %v1642_v36 }
 0x791   :  { %v1678_v19 = vmul.f32 1.442695, %v1656_v40 }
 0x792   :  { %v2000_v41 = vpop.permute.xlu1 %1999 }
 0x793   :  { %3945 = vpow2.f32 %v1678_v19  ;;  %3708 = vmatprep.subr.mxu0 %v2000_v41 }
 0x794   :  { %v4656_v55 = vpop.eup %3939 }
 0x795   :  { %v1694_v62 = vsel %vm28_vm0, %v4656_v55, 0.0 }
 0x796   :  { %1695 = vadd.xlane.f32.xlu1 %v1694_v62  ;;  %v1998_v53 = vpop.permute.xlu1 %1997 }
 0x798   :  { %v4660_v29 = vpop.eup %3941 }
 0x799   :  { %v1700_v3 = vsel %vm28_vm0, %v4660_v29, 0.0 }
 0x79a   :  { %1701 = vadd.xlane.f32.xlu1 %v1700_v3  ;;  %v4674_v51 = vpop.permute.xlu1 %2173 }
 0x79c   :  { %v4664_v60 = vpop.eup %3943 }
 0x79d   :  { %v1706_v15 = vsel %vm28_vm0, %v4664_v60, 0.0 }
 0x79e   :  { %1707 = vadd.xlane.f32.xlu1 %v1706_v15  ;;  %v2321_v15 = vld [vmem:[%s4987_s2 + $0xa0] sm:$0xff] }
 0x7a0   :  { %v4668_v21 = vpop.eup %3945 }
 0x7a1   :  { %v1712_v38 = vsel %vm28_vm0, %v4668_v21, 0.0 }
 0x7a2   :  { %1713 = vadd.xlane.f32.xlu1 %v1712_v38 }
 0x7b3   :  { %2171 = vrot.lane.b32.xlu1 %v4484_v45, %s4055_s30 }
 0x7e6   :  { %v1687_v57 = vpop.xlane.xlu0 %1686 }
 0x7e7   :  { %3947 = vrcp.f32 %v1687_v57  ;;  %v2317_v57 = vld [vmem:[%s4987_s2 + $0x80] sm:$0xff] }
 0x7ea   :  { %v1693_v49 = vpop.xlane.xlu0 %1692 }
 0x7ef   :  { %v1684_v63 = vpop.xlane.xlu1 %1683 }
 0x7f0   :  { %3949 = vrcp.f32 %v1684_v63  ;;  %v2316_v63 = vld [vmem:[%s4987_s2 + $0x78] sm:$0xff] }
 0x7f1   :  { %3951 = vrcp.f32 %v1693_v49 }
 0x7f4   :  { %v3948_v42 = vpop.eup %3947 }
 0x7f5   :  { %v1690_v59 = vpop.xlane.xlu1 %1689  ;;  %v1731_v35 = vmul.f32 %v3948_v42, %v4615_v9  ;;  %v1699_v9 = vpop.xlane.xlu0 %1698 }
 0x7f6   :  { %3953 = vrcp.f32 %v1690_v59 }
 0x7f7   :  { %3955 = vrcp.f32 %v1699_v9 }
 0x7fd   :  { %v3950_v61 = vpop.eup %3949 }
 0x7fe   :  { %v1730_v43 = vmul.f32 %v3950_v61, %v4627_v47  ;;  %v3952_v45 = vpop.eup %3951  ;;  %v1705_v47 = vpop.xlane.xlu0 %1704 }
 0x7ff   :  { %v1733_v12 = vmul.f32 %v3952_v45, %v4619_v10 }
 0x800   :  { %3691 = vmatprep.mubr.msk.f32.mxu1 %vm28_vm0, %v1730_v43 }
 0x801   :  { %3692 = vmatmul.mubr.msk.f32.vlgmr.msra.gmra.mxu1 %vm28_vm0, %v1731_v35 }
 0x802   :  { %3702 = vmatpush3.msra.mxu1 %v4610_v34  ;;  %v1711_v54 = vpop.xlane.xlu0 %1710 }
 0x803   :  { %v3954_v8 = vpop.eup %3953  ;;  %3703 = vmatprep.subr.mxu1 %v1911_v28 }
 0x804   :  { %3704 = vmatpush3.msra.mxu1 %v1911_v28  ;;  %v1732_v2 = vmul.f32 %v3954_v8, %v4634_v24  ;;  %v3956_v46 = vpop.eup %3955  ;;  %v2319_v28 = vld [vmem:[%s4987_s2 + $0x90] sm:$0xff] }
 0x805   :  { %3715 = vmatprep.subr.mxu1 %v2087_v52  ;;  %v1735_v48 = vmul.f32 %v3956_v46, %v4624_v58 }
 0x806   :  { %3698 = vmatprep.mubr.msk.f32.mxu0 %vm28_vm0, %v1732_v2  ;;  %v1717_v16 = vpop.xlane.xlu0 %1716 }
 0x807   :  { %3699 = vmatmul.mubr.msk.f32.vlgmr.msra.gmra.mxu0 %vm28_vm0, %v1733_v12 }
 0x808   :  { %3709 = vmatpush3.msra.mxu0 %v2000_v41 }
 0x809   :  { %3710 = vmatprep.subr.mxu0 %v1998_v53 }
 0x80a   :  { %3711 = vmatpush3.msra.mxu0 %v1998_v53  ;;  %v2085_v56 = vpop.permute.xlu0 %2084 }
 0x80b   :  { %3722 = vmatprep.subr.mxu0 %v4674_v51 }
 0x81f   :  { %v1696_v34 = vpop.xlane.xlu1 %1695 }
 0x820   :  { %3957 = vrcp.f32 %v1696_v34 }
 0x821   :  { %3959 = vrcp.f32 %v1705_v47 }
 0x823   :  { %v1702_v24 = vpop.xlane.xlu1 %1701 }
 0x824   :  { %3961 = vrcp.f32 %v1702_v24 }
 0x825   :  { %3963 = vrcp.f32 %v1711_v54 }
 0x827   :  { %v1708_v10 = vpop.xlane.xlu1 %1707 }
 0x828   :  { %3965 = vrcp.f32 %v1708_v10 }
 0x829   :  { %3967 = vrcp.f32 %v1717_v16 }
 0x82b   :  { %v1714_v44 = vpop.xlane.xlu1 %1713 }
 0x82c   :  { %3969 = vrcp.f32 %v1714_v44 }
 0x82d   :  { %v3958_v20 = vpop.eup %3957 }
 0x82e   :  { %v1734_v25 = vmul.f32 %v3958_v20, %v4656_v55  ;;  %v3960_v33 = vpop.eup %3959  ;;  %v3453_v20 = vld [vmem:[%s4987_s2 + $0x70] ss:$0 sm:$0xff] }
 0x82f   :  { %v1737_v32 = vmul.f32 %v3960_v33, %v4638_v0  ;;  %v2172_v58 = vpop.permute.xlu1 %2171 }
 0x830   :  { %3705 = vmatprep.mubr.msk.f32.mxu1 %vm28_vm0, %v1734_v25 }
 0x831   :  { %v3962_v30 = vpop.eup %3961  ;;  %3706 = vmatmul.mubr.msk.f32.vlgmr.msra.gmra.mxu1 %vm28_vm0, %v1735_v48 }
 0x832   :  { %3716 = vmatpush3.msra.mxu1 %v2087_v52  ;;  %v1736_v31 = vmul.f32 %v3962_v30, %v4660_v29  ;;  %v3964_v36 = vpop.eup %3963  ;;  %v2318_v52 = vld [vmem:[%s4987_s2 + $0x88] sm:$0xff] }
 0x833   :  { %3717 = vmatprep.subr.mxu1 %v2085_v56  ;;  %v1739_v41 = vmul.f32 %v3964_v36, %v4642_v11 }
 0x834   :  { %3718 = vmatpush3.msra.mxu1 %v2085_v56  ;;  %3712 = vmatprep.mubr.msk.f32.mxu0 %vm28_vm0, %v1736_v31 }
 0x835   :  { %v3966_v40 = vpop.eup %3965  ;;  %3713 = vmatmul.mubr.msk.f32.vlgmr.msra.gmra.mxu0 %vm28_vm0, %v1737_v32  ;;  %3729 = vmatprep.subr.mxu1 %v2321_v15 }
 0x836   :  { %3723 = vmatpush3.msra.mxu0 %v4674_v51  ;;  %v1738_v19 = vmul.f32 %v3966_v40, %v4664_v60  ;;  %v3968_v55 = vpop.eup %3967 }
 0x837   :  { %3724 = vmatprep.subr.mxu0 %v2172_v58  ;;  %v1741_v29 = vmul.f32 %v3968_v55, %v4646_v4  ;;  %v2323_v55 = vld [vmem:[%s4987_s2 + $0xb0] sm:$0x3f] }
 0x838   :  { %3725 = vmatpush3.msra.mxu0 %v2172_v58  ;;  %3719 = vmatprep.mubr.msk.f32.mxu1 %vm28_vm0, %v1738_v19 }
 0x839   :  { %v3970_v0 = vpop.eup %3969  ;;  %3720 = vmatmul.mubr.msk.f32.vlgmr.msra.gmra.mxu1 %vm28_vm0, %v1739_v41  ;;  %3744 = vmatprep.subr.mxu0 %v4041_v5 }
 0x83a   :  { %v1740_v62 = vmul.f32 %v3970_v0, %v4668_v21  ;;  %3730 = vmatpush3.msra.mxu1 %v2321_v15  ;;  %v2320_v21 = vld [vmem:[%s4987_s2 + $0x98] sm:$0xff]  ;;  %v2322_v0 = vld [vmem:[%s4987_s2 + $0xa8] sm:$0x3f] }
 0x83b   :  { %3731 = vmatprep.subr.mxu1 %v2320_v21 }
 0x83c   :  { %3726 = vmatprep.mubr.msk.f32.mxu0 %vm28_vm0, %v1740_v62  ;;  %3732 = vmatpush3.msra.mxu1 %v2320_v21 }
 0x83d   :  { %3727 = vmatmul.mubr.msk.f32.vlgmr.msra.gmra.mxu0 %vm28_vm0, %v1741_v29  ;;  %3733 = vmatprep.subr.mxu1 %v2319_v28 }
 0x83e   :  { %3748 = vmatprep.mubr.msk.f32.mxu0 %vm4042_vm2, %v4041_v5  ;;  %3734 = vmatpush3.msra.mxu1 %v2319_v28 }
 0x83f   :  { %3735 = vmatprep.subr.mxu1 %v2318_v52 }
 0x840   :  { %3736 = vmatpush3.msra.mxu1 %v2318_v52 }
 0x841   :  { %3737 = vmatprep.subr.mxu1 %v2317_v57 }
 0x842   :  { %3738 = vmatpush3.msra.mxu1 %v2317_v57 }
 0x843   :  { %3739 = vmatprep.subr.mxu1 %v2316_v63 }
 0x844   :  { %3740 = vmatpush3.msra.mxu1 %v2316_v63 }
 0x8c1   :  { %v3693_v60 = vpop.f32.mrf.mxu1 }
 0x8c3   :  { %v1814_v4 = vpop.f32.mrf.mxu1 }
 0x8c7   :  { %v3700_v11 = vpop.f32.mrf.mxu0 }
 0x8c8   :  { %2262 = vrot.lane.b32.xlu1 %v3700_v11, %s4057_s5 }
 0x8c9   :  { %v1901_v3 = vpop.f32.mrf.mxu0 }
 0x8ca   :  { %2260 = vrot.lane.b32.xlu0 %v1901_v3, %s4057_s5 }
 0x8f1   :  { %v3707_v38 = vpop.f32.mrf.mxu1 }
 0x8f2   :  { %2270 = vrot.lane.b32.xlu1 %v3707_v38, %s4058_s10 }
 0x8f3   :  { %v1988_v53 = vpop.f32.mrf.mxu1 }
 0x8f4   :  { %2268 = vrot.lane.b32.xlu0 %v1988_v53, %s4058_s10 }
 0x8f5   :  { %v3714_v51 = vpop.f32.mrf.mxu0 }
 0x8f6   :  { %2278 = vrot.lane.b32.xlu1 %v3714_v51, %s4059_s15 }
 0x8f7   :  { %v2075_v49 = vpop.f32.mrf.mxu0 }
 0x8f8   :  { %2276 = vrot.lane.b32.xlu0 %v2075_v49, %s4059_s15 }
 0x8f9   :  { %v3721_v59 = vpop.f32.mrf.mxu1 }
 0x8fa   :  { %2286 = vrot.lane.b32.xlu1 %v3721_v59, %s4060_s20 }
 0x8fb   :  { %v2162_v42 = vpop.f32.mrf.mxu1 }
 0x8fc   :  { %2284 = vrot.lane.b32.xlu0 %v2162_v42, %s4060_s20 }
 0x8fd   :  { %v3728_v61 = vpop.f32.mrf.mxu0 }
 0x8fe   :  { %2294 = vrot.lane.b32.xlu1 %v3728_v61, %s4061_s22 }
 0x8ff   :  { %v2249_v43 = vpop.f32.mrf.mxu0 }
 0x900   :  { %2292 = vrot.lane.b32.xlu0 %v2249_v43, %s4061_s22 }
 0x93a   :  { %v2263_v35 = vpop.permute.xlu1 %2262 }
 0x93b   :  { %v2299_v34 = vsel %vm1215_vm5, %v3693_v60, %v2263_v35 }
 0x93c   :  { %v2261_v45 = vpop.permute.xlu0 %2260 }
 0x93d   :  { %v2298_v10 = vsel %vm1215_vm5, %v1814_v4, %v2261_v45 }
 0x964   :  { %v2271_v8 = vpop.permute.xlu1 %2270 }
 0x965   :  { %v2301_v54 = vsel %vm28_vm0, %v2299_v34, %v2271_v8 }
 0x966   :  { %v2269_v2 = vpop.permute.xlu0 %2268 }
 0x967   :  { %v2300_v44 = vsel %vm28_vm0, %v2298_v10, %v2269_v2 }
 0x968   :  { %v2279_v12 = vpop.permute.xlu1 %2278 }
 0x969   :  { %v2303_v16 = vsel %vm1220_vm6, %v2301_v54, %v2279_v12 }
 0x96a   :  { %v2277_v9 = vpop.permute.xlu0 %2276 }
 0x96b   :  { %v2302_v48 = vsel %vm1220_vm6, %v2300_v44, %v2277_v9 }
 0x96c   :  { %v2287_v47 = vpop.permute.xlu1 %2286 }
 0x96d   :  { %v2305_v46 = vsel %vm1223_vm7, %v2303_v16, %v2287_v47 }
 0x96e   :  { %v2285_v24 = vpop.permute.xlu0 %2284 }
 0x96f   :  { %v2304_v30 = vsel %vm1223_vm7, %v2302_v48, %v2285_v24 }
 0x970   :  { %v2295_v25 = vpop.permute.xlu1 %2294 }
 0x971   :  { %v2307_v33 = vsel %vm1226_vm8, %v2305_v46, %v2295_v25 }
 0x972   :  { %v2293_v56 = vpop.permute.xlu0 %2292  ;;  %v2313_v31 = vadd.f32 %v3453_v20, %v2307_v33 }
 0x973   :  { %v2306_v32 = vsel %vm1226_vm8, %v2304_v30, %v2293_v56 }
 0x974   :  { %v2312_v36 = vadd.f32 %v3453_v20, %v2306_v32  ;;  %v2315_v58 = vmax.f32 %v2313_v31, 0.0 }
 0x976   :  { %v2314_v40 = vmax.f32 %v2312_v36, 0.0 }
 0x978   :  { %3741 = vmatprep.mubr.msk.f32.mxu1 %vm1229_vm9, %v2314_v40 }
 0x979   :  { %3742 = vmatmul.mubr.msk.f32.vlgmr.msra.gmra.mxu1 %vm1229_vm9, %v2315_v58 }
 0xa39   :  { %v4749_v19 = vpop.f32.mrf.mxu1 }
 0xa3a   :  { %3745 = vmatpush3.xpose.msk.msra.mxu0 %vm1220_vm6, %v4749_v19  ;;  %3756 = vmatprep.subr.mxu1 %v4749_v19 }
 0xa3b   :  { %v4754_v41 = vpop.f32.mrf.mxu1  ;;  %3757 = vmatpush3.msra.mxu1 %v4749_v19  ;;  %3746 = vmatprep.subr.mxu0 %v4041_v5 }
 0xa3c   :  { %3758 = vmatprep.subr.mxu1 %v4754_v41 }
 0xa3d   :  { %3759 = vmatpush3.msra.mxu1 %v4754_v41 }
 0xa3e   :  { %3747 = vmatpush3.xpose.msk.msra.mxu0 %vm1220_vm6, %v4754_v41 }
 0xa3f   :  { %3751 = vmatprep.subr.msk.mxu0 %vm1220_vm6, %v2323_v55 }
 0xa41   :  { %3749 = vmatmul.mubr.msk.f32.vlgmr.msra.gmra.mxu0 %vm1220_vm6, %v2322_v0 }
 0xa42   :  { %3752 = vmatpush3.xpose.msk.msra.mxu0 %vm1220_vm6, %v2323_v55  ;;  %3753 = vmatprep.mubr.msk.f32.mxu0 %vm1220_vm6, %v4754_v41 }
 0xa45   :  { %3754 = vmatmul.mubr.msk.f32.vlgmr.msra.gmra.mxu0 %vm1220_vm6, %v4749_v19 }
 0xb01   :  { %v4775_v5 = vpop.f32.mrf.mxu0 }
 0xb02   :  { %v2604_v21 = vrot.slane %v4775_v5, %v4175_v26  ;;  %v2618_v42 = vrot.slane %v4775_v5, %v4178_v27  ;;  %v2632_v2 = vrot.slane %v4775_v5, %v4191_v37  ;;  %v2646_v48 = vrot.slane %v4775_v5, %v4207_v50 }
 0xb03   :  { %v3750_v62 = vpop.f32.mrf.mxu0 }
 0xb05   :  { %v3755_v29 = vpop.f32.mrf.mxu0 }
 0xb06   :  { %2584 = vperm.xlu0 %3855, %v3755_v29   ;;  %2570 = vperm.xlu1 %3854, %v3755_v29  }
 0xb07   :  { %v2554_v11 = vpop.f32.mrf.mxu0 }
 0xb0a   :  { %3858 = vset.pattern.permute.xlu0 %v4044_v7  ;;  %3856 = vset.pattern.permute.xlu1 %v4045_v13  ;;  %v2576_v7 = vrot.slane %v4775_v5, %v4166_v23 }
 0xb0b   :  { %2598 = vperm.xlu1 %3856, %v3755_v29   ;;  %2565 = vperm.xlu0 %3858, %v2554_v11  }
 0xb0f   :  { %3857 = vset.pattern.permute.xlu1 %v4046_v14  ;;  %3861 = vset.pattern.permute.xlu0 %v4046_v14 }
 0xb10   :  { %2612 = vperm.xlu1 %3857, %v3755_v29   ;;  %2608 = vperm.xlu0 %3861, %v2554_v11  }
 0xb14   :  { %3859 = vset.pattern.permute.xlu1 %v4043_v6  ;;  %3862 = vset.pattern.permute.xlu0 %v4047_v17  ;;  %v2590_v6 = vrot.slane %v4775_v5, %v4163_v22 }
 0xb15   :  { %2580 = vperm.xlu1 %3859, %v2554_v11   ;;  %2626 = vperm.xlu0 %3862, %v3755_v29  }
 0xb19   :  { %3860 = vset.pattern.permute.xlu1 %v4045_v13  ;;  %3866 = vset.pattern.permute.xlu0 %v4048_v18 }
 0xb1a   :  { %2594 = vperm.xlu1 %3860, %v2554_v11  }
 0xb1e   :  { %3863 = vset.pattern.permute.xlu1 %v4048_v18 }
 0xb1f   :  { %2640 = vperm.xlu1 %3863, %v3755_v29  }
 0xb23   :  { %3864 = vset.pattern.permute.xlu1 %v4047_v17 }
 0xb24   :  { %2622 = vperm.xlu1 %3864, %v2554_v11  }
 0xb28   :  { %3865 = vset.pattern.permute.xlu1 %v4048_v18 }
 0xb29   :  { %2636 = vperm.xlu1 %3865, %v2554_v11  }
 0xb81   :  { %v2585_v14 = vpop.permute.xlu0 %2584  ;;  %v2571_v13 = vpop.permute.xlu1 %2570 }
 0xb82   :  { %v2592_v3 = vadd.f32 %v2590_v6, %v2585_v14  ;;  %v2578_v60 = vadd.f32 %v2576_v7, %v2571_v13 }
 0xb84   :  { %v2652_v15 = vmul.f32 0.2, %v2592_v3  ;;  %v2650_v4 = vmul.f32 0.2, %v2578_v60 }
 0xb86   :  { %v2664_v17 = vmax.f32 %v2592_v3, %v2652_v15  ;;  %v2662_v38 = vmax.f32 %v2578_v60, %v2650_v4  ;;  %v2599_v28 = vpop.permute.xlu1 %2598  ;;  %v2566_v18 = vpop.permute.xlu0 %2565 }
 0xb87   :  { %v2606_v53 = vadd.f32 %v2604_v21, %v2599_v28  ;;  %v2577_v52 = vadd.f32 %v2576_v7, %v2566_v18 }
 0xb88   :  { %v4795_v22 = vadd.f32 %v2662_v38, %v4193_v39  ;;  %v4798_v23 = vadd.f32 %v2664_v17, %v4193_v39 }
 0xb89   :  { %v2654_v51 = vmul.f32 0.2, %v2606_v53  ;;  %v2649_v57 = vmul.f32 0.2, %v2577_v52 }
 0xb8a   :  { %v2688_v63 = vsel %vm28_vm0, %v4795_v22, -inf  ;;  %v2694_v26 = vsel %vm28_vm0, %v4798_v23, -inf }
 0xb8b   :  { %v2666_v49 = vmax.f32 %v2606_v53, %v2654_v51  ;;  %v2661_v59 = vmax.f32 %v2577_v52, %v2649_v57  ;;  %v2613_v61 = vpop.permute.xlu1 %2612  ;;  %2689 = vmax.xlane.f32.xlu1 %v2688_v63  ;;  %2695 = vmax.xlane.f32.xlu0 %v2694_v26  ;;  %v2609_v43 = vpop.permute.xlu0 %2608 }
 0xb8c   :  { %v2620_v35 = vadd.f32 %v2618_v42, %v2613_v61  ;;  %v2619_v29 = vadd.f32 %v2618_v42, %v2609_v43 }
 0xb8d   :  { %v4807_v45 = vadd.f32 %v2666_v49, %v4193_v39  ;;  %v4814_v12 = vadd.f32 %v2661_v59, %v4222_v1 }
 0xb8e   :  { %v2656_v47 = vmul.f32 0.2, %v2620_v35 }
 0xb8f   :  { %v2700_v8 = vsel %vm28_vm0, %v4807_v45, -inf  ;;  %v2685_v10 = vsel %vm28_vm0, %v4814_v12, -inf }
 0xb90   :  { %v2581_v9 = vpop.permute.xlu1 %2580  ;;  %2701 = vmax.xlane.f32.xlu0 %v2700_v8  ;;  %v2627_v27 = vpop.permute.xlu0 %2626  ;;  %v2668_v16 = vmax.f32 %v2620_v35, %v2656_v47 }
 0xb91   :  { %v2591_v34 = vadd.f32 %v2590_v6, %v2581_v9  ;;  %v2634_v54 = vadd.f32 %v2632_v2, %v2627_v27  ;;  %v2655_v6 = vmul.f32 0.2, %v2619_v29 }
 0xb92   :  { %v4826_v30 = vadd.f32 %v2668_v16, %v4193_v39 }
 0xb93   :  { %v2651_v24 = vmul.f32 0.2, %v2591_v34  ;;  %v2658_v46 = vmul.f32 0.2, %v2634_v54  ;;  %v2667_v3 = vmax.f32 %v2619_v29, %v2655_v6 }
 0xb94   :  { %2686 = vmax.xlane.f32.xlu0 %v2685_v10  ;;  %v2706_v36 = vsel %vm28_vm0, %v4826_v30, -inf }
 0xb95   :  { %v2663_v44 = vmax.f32 %v2591_v34, %v2651_v24  ;;  %v2595_v20 = vpop.permute.xlu1 %2594  ;;  %v2670_v25 = vmax.f32 %v2634_v54, %v2658_v46  ;;  %v4852_v38 = vadd.f32 %v2667_v3, %v4222_v1 }
 0xb96   :  { %v2605_v5 = vadd.f32 %v2604_v21, %v2595_v20 }
 0xb97   :  { %v4819_v37 = vadd.f32 %v2663_v44, %v4222_v1  ;;  %v4832_v40 = vadd.f32 %v2670_v25, %v4193_v39  ;;  %v2703_v18 = vsel %vm28_vm0, %v4852_v38, -inf }
 0xb98   :  { %v2653_v11 = vmul.f32 0.2, %v2605_v5 }
 0xb99   :  { %v2691_v33 = vsel %vm28_vm0, %v4819_v37, -inf  ;;  %v2712_v58 = vsel %vm28_vm0, %v4832_v40, -inf }
 0xb9a   :  { %v2641_v56 = vpop.permute.xlu1 %2640  ;;  %2692 = vmax.xlane.f32.xlu0 %v2691_v33  ;;  %v2665_v7 = vmax.f32 %v2605_v5, %v2653_v11 }
 0xb9b   :  { %v2648_v31 = vadd.f32 %v2646_v48, %v2641_v56 }
 0xb9c   :  { %2900 = vrot.lane.b32.xlu1 %v4749_v19, %s4063_s26 }
 0xb9d   :  { %v2660_v32 = vmul.f32 0.2, %v2648_v31 }
 0xb9e   :  { %2707 = vmax.xlane.f32.xlu0 %v2706_v36 }
 0xb9f   :  { %v2672_v50 = vmax.f32 %v2648_v31, %v2660_v32  ;;  %v2623_v62 = vpop.permute.xlu1 %2622 }
 0xba0   :  { %2987 = vrot.lane.b32.xlu1 %v4749_v19, %s4051_s24  ;;  %v2633_v14 = vadd.f32 %v2632_v2, %v2623_v62 }
 0xba1   :  { %v4839_v55 = vadd.f32 %v2672_v50, %v4193_v39  ;;  %v4845_v39 = vadd.f32 %v2665_v7, %v4222_v1 }
 0xba2   :  { %2713 = vmax.xlane.f32.xlu0 %v2712_v58  ;;  %v2657_v60 = vmul.f32 0.2, %v2633_v14 }
 0xba3   :  { %v2718_v0 = vsel %vm28_vm0, %v4839_v55, -inf  ;;  %v2697_v17 = vsel %vm28_vm0, %v4845_v39, -inf }
 0xba4   :  { %v2637_v13 = vpop.permute.xlu1 %2636  ;;  %v2669_v4 = vmax.f32 %v2633_v14, %v2657_v60 }
 0xba5   :  { %v2647_v15 = vadd.f32 %v2646_v48, %v2637_v13 }
 0xba6   :  { %2719 = vmax.xlane.f32.xlu0 %v2718_v0  ;;  %v4859_v53 = vadd.f32 %v2669_v4, %v4222_v1 }
 0xba7   :  { %v2659_v21 = vmul.f32 0.2, %v2647_v15 }
 0xba8   :  { %v2709_v52 = vsel %vm28_vm0, %v4859_v53, -inf }
 0xba9   :  { %v2671_v28 = vmax.f32 %v2647_v15, %v2659_v21 }
 0xbab   :  { %v4864_v51 = vadd.f32 %v2671_v28, %v4222_v1 }
 0xbad   :  { %v2715_v57 = vsel %vm28_vm0, %v4864_v51, -inf }
 0xbbc   :  { %2898 = vrot.lane.b32.xlu0 %v4754_v41, %s4063_s26 }
 0xbc0   :  { %2985 = vrot.lane.b32.xlu0 %v4754_v41, %s4051_s24  ;;  %s4064_s24 = smov 116  }
 0xbc4   :  { %2698 = vmax.xlane.f32.xlu1 %v2697_v17  ;;  %3161 = vrot.lane.b32.xlu0 %v4749_v19, %s4050_s23 }
 0xbc8   :  { %2704 = vmax.xlane.f32.xlu1 %v2703_v18 }
 0xbcc   :  { %2710 = vmax.xlane.f32.xlu1 %v2709_v52 }
 0xbd0   :  { %2716 = vmax.xlane.f32.xlu1 %v2715_v57 }
 0xbe1   :  { %3074 = vrot.lane.b32.xlu1 %v4749_v19, %s4064_s24 }
 0xbe5   :  { %3072 = vrot.lane.b32.xlu1 %v4754_v41, %s4064_s24 }
 0xbe9   :  { %3248 = vrot.lane.b32.xlu1 %v4749_v19, %s4065_s27 }
 0xc14   :  { %v2690_v63 = vpop.xlane.xlu1 %2689  ;;  %v2696_v26 = vpop.xlane.xlu0 %2695 }
 0xc15   :  { %v2722_v49 = vsub.f32 %v4795_v22, %v2690_v63  ;;  %v2724_v1 = vsub.f32 %v4798_v23, %v2696_v26 }
 0xc17   :  { %v2735_v59 = vmul.f32 1.442695, %v2722_v49  ;;  %v2739_v42 = vmul.f32 1.442695, %v2724_v1 }
 0xc18   :  { %v2901_v61 = vpop.permute.xlu1 %2900 }
 0xc19   :  { %3971 = vpow2.f32 %v2735_v59  ;;  %3763 = vmatprep.subr.mxu0 %v2901_v61  ;;  %v2702_v43 = vpop.xlane.xlu0 %2701 }
 0xc1a   :  { %v2726_v35 = vsub.f32 %v4807_v45, %v2702_v43  ;;  %3764 = vmatpush3.msra.mxu0 %v2901_v61  ;;  %3973 = vpow2.f32 %v2739_v42 }
 0xc1c   :  { %v2743_v8 = vmul.f32 1.442695, %v2726_v35  ;;  %v4875_v2 = vpop.permute.xlu1 %2987 }
 0xc1d   :  { %3770 = vmatprep.subr.mxu1 %v4875_v2  ;;  %v2687_v19 = vpop.xlane.xlu0 %2686 }
 0xc1e   :  { %v2721_v22 = vsub.f32 %v4814_v12, %v2687_v19  ;;  %3975 = vpow2.f32 %v2743_v8 }
 0xc20   :  { %v2733_v23 = vmul.f32 1.442695, %v2721_v22 }
 0xc22   :  { %3977 = vpow2.f32 %v2733_v23 }
 0xc23   :  { %v2693_v9 = vpop.xlane.xlu0 %2692 }
 0xc24   :  { %v2723_v27 = vsub.f32 %v4819_v37, %v2693_v9 }
 0xc26   :  { %v4880_v47 = vpop.eup %3971  ;;  %v2737_v34 = vmul.f32 1.442695, %v2723_v27 }
 0xc27   :  { %v2708_v45 = vpop.xlane.xlu0 %2707  ;;  %v2760_v54 = vsel %vm28_vm0, %v4880_v47, 0.0  ;;  %v4884_v24 = vpop.eup %3973 }
 0xc28   :  { %3979 = vpow2.f32 %v2737_v34  ;;  %v2728_v10 = vsub.f32 %v4826_v30, %v2708_v45  ;;  %2761 = vadd.xlane.f32.xlu0 %v2760_v54  ;;  %v2766_v44 = vsel %vm28_vm0, %v4884_v24, 0.0 }
 0xc2a   :  { %v2747_v12 = vmul.f32 1.442695, %v2728_v10 }
 0xc2b   :  { %v2714_v16 = vpop.xlane.xlu0 %2713  ;;  %v4889_v46 = vpop.eup %3975 }
 0xc2c   :  { %3981 = vpow2.f32 %v2747_v12  ;;  %v2730_v20 = vsub.f32 %v4832_v40, %v2714_v16  ;;  %2767 = vadd.xlane.f32.xlu0 %v2766_v44  ;;  %v2772_v33 = vsel %vm28_vm0, %v4889_v46, 0.0 }
 0xc2e   :  { %v2751_v37 = vmul.f32 1.442695, %v2730_v20 }
 0xc2f   :  { %v4892_v25 = vpop.eup %3977  ;;  %v2720_v48 = vpop.xlane.xlu0 %2719 }
 0xc30   :  { %3983 = vpow2.f32 %v2751_v37  ;;  %v2732_v30 = vsub.f32 %v4839_v55, %v2720_v48  ;;  %2773 = vadd.xlane.f32.xlu0 %v2772_v33  ;;  %v2757_v56 = vsel %vm28_vm0, %v4892_v25, 0.0 }
 0xc31   :  { %2758 = vadd.xlane.f32.xlu1 %v2757_v56 }
 0xc32   :  { %v2755_v31 = vmul.f32 1.442695, %v2732_v30 }
 0xc33   :  { %v2899_v32 = vpop.permute.xlu0 %2898 }
 0xc34   :  { %3985 = vpow2.f32 %v2755_v31  ;;  %3765 = vmatprep.subr.mxu0 %v2899_v32 }
 0xc35   :  { %v4899_v36 = vpop.eup %3979  ;;  %3766 = vmatpush3.msra.mxu0 %v2899_v32 }
 0xc36   :  { %v2763_v40 = vsel %vm28_vm0, %v4899_v36, 0.0 }
 0xc37   :  { %2764 = vadd.xlane.f32.xlu1 %v2763_v40  ;;  %v2986_v26 = vpop.permute.xlu0 %2985 }
 0xc39   :  { %v4903_v50 = vpop.eup %3981 }
 0xc3a   :  { %v2778_v58 = vsel %vm28_vm0, %v4903_v50, 0.0 }
 0xc3b   :  { %2779 = vadd.xlane.f32.xlu0 %v2778_v58  ;;  %v3162_v1 = vpop.permute.xlu0 %3161 }
 0xc3d   :  { %v4907_v55 = vpop.eup %3983 }
 0xc3e   :  { %v2784_v0 = vsel %vm28_vm0, %v4907_v55, 0.0 }
 0xc3f   :  { %2785 = vadd.xlane.f32.xlu0 %v2784_v0 }
 0xc41   :  { %v4911_v5 = vpop.eup %3985 }
 0xc42   :  { %v2790_v62 = vsel %vm28_vm0, %v4911_v5, 0.0 }
 0xc43   :  { %2791 = vadd.xlane.f32.xlu0 %v2790_v62 }
 0xc4d   :  { %v2699_v29 = vpop.xlane.xlu1 %2698 }
 0xc4e   :  { %v2725_v11 = vsub.f32 %v4845_v39, %v2699_v29 }
 0xc50   :  { %v2741_v6 = vmul.f32 1.442695, %v2725_v11 }
 0xc51   :  { %v2705_v7 = vpop.xlane.xlu1 %2704 }
 0xc52   :  { %3987 = vpow2.f32 %v2741_v6  ;;  %v2727_v14 = vsub.f32 %v4852_v38, %v2705_v7 }
 0xc54   :  { %v2745_v13 = vmul.f32 1.442695, %v2727_v14 }
 0xc55   :  { %v2711_v3 = vpop.xlane.xlu1 %2710 }
 0xc56   :  { %3989 = vpow2.f32 %v2745_v13  ;;  %v2729_v60 = vsub.f32 %v4859_v53, %v2711_v3 }
 0xc58   :  { %v2749_v15 = vmul.f32 1.442695, %v2729_v60 }
 0xc59   :  { %v2717_v4 = vpop.xlane.xlu1 %2716  ;;  %3159 = vrot.lane.b32.xlu0 %v4754_v41, %s4050_s23  ;;  %s4066_s23 = smov 4  }
 0xc5a   :  { %3991 = vpow2.f32 %v2749_v15  ;;  %v2731_v21 = vsub.f32 %v4864_v51, %v2717_v4 }
 0xc5c   :  { %v2753_v17 = vmul.f32 1.442695, %v2731_v21 }
 0xc5d   :  { %v3075_v39 = vpop.permute.xlu1 %3074 }
 0xc5e   :  { %3993 = vpow2.f32 %v2753_v17  ;;  %3777 = vmatprep.subr.mxu0 %v3075_v39 }
 0xc5f   :  { %v4921_v28 = vpop.eup %3987 }
 0xc60   :  { %v2769_v38 = vsel %vm28_vm0, %v4921_v28, 0.0 }
 0xc61   :  { %2770 = vadd.xlane.f32.xlu1 %v2769_v38  ;;  %v3073_v49 = vpop.permute.xlu1 %3072 }
 0xc63   :  { %v4925_v18 = vpop.eup %3989 }
 0xc64   :  { %v2775_v53 = vsel %vm28_vm0, %v4925_v18, 0.0 }
 0xc65   :  { %2776 = vadd.xlane.f32.xlu1 %v2775_v53  ;;  %v4939_v59 = vpop.permute.xlu1 %3248 }
 0xc67   :  { %v4929_v52 = vpop.eup %3991 }
 0xc68   :  { %v2781_v51 = vsel %vm28_vm0, %v4929_v52, 0.0 }
 0xc69   :  { %2782 = vadd.xlane.f32.xlu1 %v2781_v51 }
 0xc6b   :  { %v4933_v57 = vpop.eup %3993 }
 0xc6c   :  { %v2787_v63 = vsel %vm28_vm0, %v4933_v57, 0.0 }
 0xc6d   :  { %2788 = vadd.xlane.f32.xlu1 %v2787_v63 }
 0xc7e   :  { %3246 = vrot.lane.b32.xlu1 %v4754_v41, %s4065_s27 }
 0xcb1   :  { %v2762_v42 = vpop.xlane.xlu0 %2761 }
 0xcb2   :  { %3995 = vrcp.f32 %v2762_v42 }
 0xcb5   :  { %v2768_v43 = vpop.xlane.xlu0 %2767 }
 0xcba   :  { %v2759_v61 = vpop.xlane.xlu1 %2758 }
 0xcbb   :  { %3997 = vrcp.f32 %v2759_v61 }
 0xcbc   :  { %3999 = vrcp.f32 %v2768_v43 }
 0xcbf   :  { %v3996_v8 = vpop.eup %3995 }
 0xcc0   :  { %v2765_v35 = vpop.xlane.xlu1 %2764  ;;  %v2806_v23 = vmul.f32 %v3996_v8, %v4880_v47  ;;  %v2774_v47 = vpop.xlane.xlu0 %2773 }
 0xcc1   :  { %4001 = vrcp.f32 %v2765_v35 }
 0xcc2   :  { %4003 = vrcp.f32 %v2774_v47 }
 0xcc4   :  { %v2780_v45 = vpop.xlane.xlu0 %2779 }
 0xcc8   :  { %v3998_v19 = vpop.eup %3997  ;;  %v2786_v54 = vpop.xlane.xlu0 %2785 }
 0xcc9   :  { %v2805_v22 = vmul.f32 %v3998_v19, %v4892_v25  ;;  %v4000_v41 = vpop.eup %3999 }
 0xcca   :  { %v2808_v34 = vmul.f32 %v4000_v41, %v4884_v24 }
 0xccb   :  { %3760 = vmatprep.mubr.msk.f32.mxu1 %vm28_vm0, %v2805_v22 }
 0xccc   :  { %3761 = vmatmul.mubr.msk.f32.vlgmr.msra.gmra.mxu1 %vm28_vm0, %v2806_v23  ;;  %v2792_v12 = vpop.xlane.xlu0 %2791 }
 0xccd   :  { %3771 = vmatpush3.msra.mxu1 %v4875_v2 }
 0xcce   :  { %v4002_v9 = vpop.eup %4001  ;;  %3772 = vmatprep.subr.mxu1 %v2986_v26 }
 0xccf   :  { %3773 = vmatpush3.msra.mxu1 %v2986_v26  ;;  %v2807_v27 = vmul.f32 %v4002_v9, %v4899_v36  ;;  %v4004_v44 = vpop.eup %4003 }
 0xcd0   :  { %3784 = vmatprep.subr.mxu1 %v3162_v1  ;;  %v2810_v25 = vmul.f32 %v4004_v44, %v4889_v46  ;;  %v3160_v30 = vpop.permute.xlu0 %3159 }
 0xcd1   :  { %3767 = vmatprep.mubr.msk.f32.mxu0 %vm28_vm0, %v2807_v27 }
 0xcd2   :  { %3768 = vmatmul.mubr.msk.f32.vlgmr.msra.gmra.mxu0 %vm28_vm0, %v2808_v34 }
 0xcd3   :  { %3778 = vmatpush3.msra.mxu0 %v3075_v39 }
 0xcd4   :  { %3779 = vmatprep.subr.mxu0 %v3073_v49 }
 0xcd5   :  { %3780 = vmatpush3.msra.mxu0 %v3073_v49 }
 0xcd6   :  { %3791 = vmatprep.subr.mxu0 %v4939_v59 }
 0xcea   :  { %v2771_v2 = vpop.xlane.xlu1 %2770 }
 0xceb   :  { %4005 = vrcp.f32 %v2771_v2 }
 0xcec   :  { %4007 = vrcp.f32 %v2780_v45 }
 0xcee   :  { %v2777_v10 = vpop.xlane.xlu1 %2776 }
 0xcef   :  { %4009 = vrcp.f32 %v2777_v10 }
 0xcf0   :  { %4011 = vrcp.f32 %v2786_v54 }
 0xcf2   :  { %v2783_v24 = vpop.xlane.xlu1 %2782 }
 0xcf3   :  { %4013 = vrcp.f32 %v2783_v24 }
 0xcf4   :  { %4015 = vrcp.f32 %v2792_v12 }
 0xcf6   :  { %v2789_v16 = vpop.xlane.xlu1 %2788 }
 0xcf7   :  { %4017 = vrcp.f32 %v2789_v16 }
 0xcf8   :  { %v4006_v20 = vpop.eup %4005 }
 0xcf9   :  { %v2809_v37 = vmul.f32 %v4006_v20, %v4921_v28  ;;  %v4008_v48 = vpop.eup %4007 }
 0xcfa   :  { %v2812_v31 = vmul.f32 %v4008_v48, %v4903_v50  ;;  %v3247_v46 = vpop.permute.xlu1 %3246 }
 0xcfb   :  { %3774 = vmatprep.mubr.msk.f32.mxu1 %vm28_vm0, %v2809_v37 }
 0xcfc   :  { %v4010_v33 = vpop.eup %4009  ;;  %3775 = vmatmul.mubr.msk.f32.vlgmr.msra.gmra.mxu1 %vm28_vm0, %v2810_v25 }
 0xcfd   :  { %3785 = vmatpush3.msra.mxu1 %v3162_v1  ;;  %v2811_v56 = vmul.f32 %v4010_v33, %v4925_v18  ;;  %v4012_v32 = vpop.eup %4011  ;;  %v3474_v1 = vld [vmem:[%s4987_s2 + $0xb8] ss:$0 sm:$0xff]  ;;  %s4019_s2 = scalar_lea.vmem %s3400_s7, 256 }
 0xcfe   :  { %3786 = vmatprep.subr.mxu1 %v3160_v30  ;;  %v2814_v58 = vmul.f32 %v4012_v32, %v4907_v55  ;;  %p4020_p0 = scmp.ne.s32.totalorder %s3400_s7, %s4019_s2  ;;  %p4025_p2 = scmp.lt.s32.totalorder %s4019_s2, %s4019_s2 }
 0xcff   :  { %3787 = vmatpush3.msra.mxu1 %v3160_v30  ;;  %3781 = vmatprep.mubr.msk.f32.mxu0 %vm28_vm0, %v2811_v56 }
 0xd00   :  { %v4014_v36 = vpop.eup %4013  ;;  %3782 = vmatmul.mubr.msk.f32.vlgmr.msra.gmra.mxu0 %vm28_vm0, %v2812_v31  ;;  %p4026_p3 = por %p4025_p2, %p4024_p1 }
 0xd01   :  { %3792 = vmatpush3.msra.mxu0 %v4939_v59  ;;  %v2813_v40 = vmul.f32 %v4014_v36, %v4929_v52  ;;  %v4016_v0 = vpop.eup %4015 }
 0xd02   :  { %3793 = vmatprep.subr.mxu0 %v3247_v46  ;;  %v2816_v29 = vmul.f32 %v4016_v0, %v4911_v5  ;;  %p4027_p4 = pnand %p4026_p3, %p4020_p0 }
 0xd03   :  { %3794 = vmatpush3.msra.mxu0 %v3247_v46  ;;  %3788 = vmatprep.mubr.msk.f32.mxu1 %vm28_vm0, %v2813_v40 }
 0xd04   :  { %v4018_v50 = vpop.eup %4017  ;;  %3789 = vmatmul.mubr.msk.f32.vlgmr.msra.gmra.mxu1 %vm28_vm0, %v2814_v58 }
 0xd05   :  { %v2815_v62 = vmul.f32 %v4018_v50, %v4933_v57 }
 0xd07   :  { %3795 = vmatprep.mubr.msk.f32.mxu0 %vm28_vm0, %v2815_v62 }
 0xd08   :  { %3796 = vmatmul.mubr.msk.f32.vlgmr.msra.gmra.mxu0 %vm28_vm0, %v2816_v29 }
 0xd8c   :  { %v3762_v55 = vpop.f32.mrf.mxu1 }
 0xd8e   :  { %v2889_v7 = vpop.f32.mrf.mxu1 }
 0xd92   :  { %v3769_v11 = vpop.f32.mrf.mxu0 }
 0xd93   :  { %3337 = vrot.lane.b32.xlu1 %v3769_v11, %s4066_s23 }
 0xd94   :  { %v2976_v6 = vpop.f32.mrf.mxu0 }
 0xd95   :  { %3335 = vrot.lane.b32.xlu0 %v2976_v6, %s4066_s23 }
 0xdbc   :  { %v3776_v14 = vpop.f32.mrf.mxu1 }
 0xdbd   :  { %3345 = vrot.lane.b32.xlu1 %v3776_v14, %s4057_s5 }
 0xdbe   :  { %v3063_v13 = vpop.f32.mrf.mxu1 }
 0xdbf   :  { %3343 = vrot.lane.b32.xlu0 %v3063_v13, %s4057_s5 }
 0xdc0   :  { %v3783_v3 = vpop.f32.mrf.mxu0 }
 0xdc1   :  { %3353 = vrot.lane.b32.xlu1 %v3783_v3, %s4067_s28 }
 0xdc2   :  { %v3150_v5 = vpop.f32.mrf.mxu0 }
 0xdc3   :  { %3351 = vrot.lane.b32.xlu0 %v3150_v5, %s4067_s28 }
 0xdc4   :  { %v3790_v60 = vpop.f32.mrf.mxu1 }
 0xdc5   :  { %3361 = vrot.lane.b32.xlu1 %v3790_v60, %s4058_s10 }
 0xdc6   :  { %v3237_v15 = vpop.f32.mrf.mxu1 }
 0xdc7   :  { %3359 = vrot.lane.b32.xlu0 %v3237_v15, %s4058_s10 }
 0xdc8   :  { %v3797_v4 = vpop.f32.mrf.mxu0 }
 0xdc9   :  { %3369 = vrot.lane.b32.xlu1 %v3797_v4, %s4068_s29 }
 0xdca   :  { %v3324_v21 = vpop.f32.mrf.mxu0 }
 0xdcb   :  { %3367 = vrot.lane.b32.xlu0 %v3324_v21, %s4068_s29 }
 0xe05   :  { %v3338_v17 = vpop.permute.xlu1 %3337 }
 0xe06   :  { %v3375_v51 = vsel %vm3373_vm10, %v3762_v55, %v3338_v17 }
 0xe07   :  { %v3336_v39 = vpop.permute.xlu0 %3335 }
 0xe08   :  { %v3374_v26 = vsel %vm3373_vm10, %v2889_v7, %v3336_v39 }
 0xe2f   :  { %v3346_v28 = vpop.permute.xlu1 %3345 }
 0xe30   :  { %v3377_v57 = vsel %vm1215_vm5, %v3375_v51, %v3346_v28 }
 0xe31   :  { %v3344_v38 = vpop.permute.xlu0 %3343 }
 0xe32   :  { %v3376_v59 = vsel %vm1215_vm5, %v3374_v26, %v3344_v38 }
 0xe33   :  { %v3354_v18 = vpop.permute.xlu1 %3353 }
 0xe34   :  { %v3380_v49 = vsel %vm3378_vm11, %v3377_v57, %v3354_v18 }
 0xe35   :  { %v3352_v53 = vpop.permute.xlu0 %3351 }
 0xe36   :  { %v3379_v43 = vsel %vm3378_vm11, %v3376_v59, %v3352_v53 }
 0xe37   :  { %v3362_v52 = vpop.permute.xlu1 %3361 }
 0xe38   :  { %v3382_v42 = vsel %vm28_vm0, %v3380_v49, %v3362_v52 }
 0xe39   :  { %v3360_v63 = vpop.permute.xlu0 %3359 }
 0xe3a   :  { %v3381_v8 = vsel %vm28_vm0, %v3379_v43, %v3360_v63 }
 0xe3b   :  { %v3370_v61 = vpop.permute.xlu1 %3369 }
 0xe3c   :  { %v3385_v35 = vsel %vm3383_vm12, %v3382_v42, %v3370_v61 }
 0xe3d   :  { %v3391_v19 = vadd.f32 %v3474_v1, %v3385_v35  ;;  %v3368_v22 = vpop.permute.xlu0 %3367 }
 0xe3e   :  { %v3384_v23 = vsel %vm3383_vm12, %v3381_v8, %v3368_v22 }
 0xe3f   :  { %3393 = vst.msk [vmem:[#allocation2 + $0x8] sm:$0xff] %vm1220_vm6, %v3391_v19  ;;  %v3390_v41 = vadd.f32 %v3474_v1, %v3384_v23 }
 0xe41   :  { %3392 = vst.msk [vmem:[#allocation2] sm:$0xff] %vm1220_vm6, %v3390_v41 }
 0xe42   :  { %4030 = shalt.err (!%p4027_p4)
}
 0xe43   :  { %s4070_s25 = smov 128  }
 0xe44   :  { %3405 = dma.vmem_to_hbm [thread:$0]  %s3400_s7, 256, %s4988_s3, [#allocation3], %s4070_s25, %s4070_s25, %s4057_s5  }
 0xe45   :  { %4039 = dma.done.wait [#allocation3], 256  }
 0xe46   :  { %4040 = vsyncadd [#allocation3], 4294967040 }
 0xe47   :  { %3409 = vsyncpa [#allocation3], 1 }

</bundles_post_ra>
